<compile_context>
chip_gen: v6e
topology: v6e:2x2x1
jax: 0.10.0
libtpu: 0.0.40
codegen_flags: <defaults>
</compile_context>

<pallas_src>
import functools

import jax
import jax.numpy as jnp
from jax import lax
from jax.experimental import pallas as pl
from jax.experimental.pallas import tpu as pltpu


def _resblock_kernel(x_ref, mask_ref, w1_ref, b1_ref, w2_ref, b2_ref,
                     w3_ref, b3_ref, o_ref, stacked_ref, *, W):
    # x_ref:       (C, B*P)     B packed images; channels on sublanes, pixels on lanes
    # mask_ref:    (9, B*P)     precomputed border masks, tap k = ky*3+kx
    # w1_ref:      (Ch, C)      conv1 1x1 weight (Cout, Cin)
    # b1_ref:      (Ch, 1)
    # w2_ref:      (Ch, 9*Ch)   conv2 3x3 weight, column k*Ch+ci = w2[co, ci, ky, kx]
    # b2_ref:      (Ch, 1)
    # w3_ref:      (C, Ch)      conv3 1x1 weight
    # b3_ref:      (C, 1)
    # o_ref:       (C, B*P)
    # stacked_ref: (9*Ch, B*P)  VMEM scratch for the im2col-along-K stack
    BP = x_ref.shape[1]
    Ch = w1_ref.shape[0]

    # ---- conv1 (1x1) + ReLU :  (Ch, C) @ (C, B*P) -> (Ch, B*P) ----
    h1 = jnp.dot(w1_ref[...], x_ref[...], preferred_element_type=jnp.float32)
    h1 = jnp.maximum(h1 + b1_ref[...], 0.0)

    # ---- conv2 (3x3, pad=1) as ONE K=9*Ch matmul -----------------------------
    # Tap (ky,kx) needs input pixel p + s with s = (ky-1)*W + (kx-1).  Realize
    # the shift as a lane rotation (XLU) + precomputed border mask; wrapped
    # lanes (both across image borders and across packed-image boundaries)
    # are always masked.  Each tap is stored straight into the VMEM scratch.
    k = 0
    for ky in range(3):
        for kx in range(3):
            dy, dx = ky - 1, kx - 1
            s = dy * W + dx
            shifted = h1 if s == 0 else pltpu.roll(h1, shift=(-s) % BP, axis=1)
            stacked_ref[pl.ds(k * Ch, Ch), :] = shifted * mask_ref[pl.ds(k, 1), :]
            k += 1

    h2 = jnp.dot(w2_ref[...], stacked_ref[...], preferred_element_type=jnp.float32)
    h2 = jnp.maximum(h2 + b2_ref[...], 0.0)                     # (Ch, B*P)

    # ---- conv3 (1x1) + bias + residual ----
    out = jnp.dot(w3_ref[...], h2, preferred_element_type=jnp.float32)
    o_ref[...] = out + b3_ref[...] + x_ref[...]


def resblock_pallas(x_nchw, w1, b1, w2, b2, w3, b3, *, batch_block=None):
    """x_nchw: (N, C, H, W) f32.  Params in PyTorch nn.Conv2d layouts:
       w1 (Ch, C), b1 (Ch,), w2 (Ch, Ch, 3, 3), b2 (Ch,), w3 (C, Ch), b3 (C,).
       Returns (N, C, H, W)."""
    N, C, H, W = x_nchw.shape
    Ch = w1.shape[0]
    P = H * W

    # --- pick the batch-packing factor B -------------------------------------
    # Target ~2048 lanes per step, but keep at least 2 grid steps (so the
    # "parallel" axis can shard across both v7x TensorCores).
    if batch_block is None:
        target_lanes = 2048
        B = max(1, min(target_lanes // P if P <= target_lanes else 1, N))
        if N >= 2:
            B = min(B, pl.cdiv(N, 2))
    else:
        B = batch_block
    Npad = pl.cdiv(N, B) * B
    BP = B * P

    # --- pack the batch along the lane axis ----------------------------------
    x3 = x_nchw.reshape(N, C, P)
    if Npad != N:
        x3 = jnp.pad(x3, ((0, Npad - N), (0, 0), (0, 0)))
    # (N, C, P) -> (C, N, P) -> (C, N*P): each image is a contiguous P-lane
    # block; B images per grid step.
    x_packed = jnp.transpose(x3, (1, 0, 2)).reshape(C, Npad * P)

    # --- precompute the 9 boundary masks (grid-invariant, lane-dense) --------
    # Derived from pix % P so rolls never leak pixels across packed images.
    pix = jnp.arange(BP, dtype=jnp.int32) % P
    py = pix // W
    px = pix % W
    mask_rows = []
    for ky in range(3):
        for kx in range(3):
            dy, dx = ky - 1, kx - 1
            valid = ((py + dy >= 0) & (py + dy < H) &
                     (px + dx >= 0) & (px + dx < W))
            mask_rows.append(valid)
    masks = jnp.stack(mask_rows, axis=0).astype(jnp.float32)    # (9, BP)

    # (Co, Ci, Kh, Kw) -> (Co, Kh, Kw, Ci) -> (Co, 9*Ci); column k*Ch+ci matches
    # the in-kernel tap stacking order (k = ky*3 + kx).
    w2_flat = jnp.transpose(w2, (0, 2, 3, 1)).reshape(Ch, 9 * Ch)
    b1c = b1.reshape(Ch, 1)
    b2c = b2.reshape(Ch, 1)
    b3c = b3.reshape(C, 1)

    kernel = functools.partial(_resblock_kernel, W=W)

    # --- VMEM working-set estimate; raise scoped limit only when needed ------
    # (x + out double-buffered) + im2col scratch + masks + resident weights.
    est_bytes = 4 * (2 * C * BP + 2 * C * BP + 9 * Ch * BP + 9 * BP
                     + Ch * C + Ch * 9 * Ch + C * Ch + 2 * Ch + C
                     + 2 * Ch * BP)                              # h1/h2 headroom
    cp_kwargs = dict(dimension_semantics=("parallel",))
    if est_bytes > 12 * 1024 * 1024:     # v5e default scoped VMEM is 16 MiB
        cp_kwargs["vmem_limit_bytes"] = int(min(2 * est_bytes, 100 * 1024 * 1024))

    out = pl.pallas_call(
        kernel,
        out_shape=jax.ShapeDtypeStruct((C, Npad * P), jnp.float32),
        grid=(Npad // B,),
        in_specs=[
            pl.BlockSpec((C, BP), lambda n: (0, n)),             # packed x
            pl.BlockSpec((9, BP), lambda n: (0, 0)),             # border masks
            pl.BlockSpec((Ch, C), lambda n: (0, 0)),
            pl.BlockSpec((Ch, 1), lambda n: (0, 0)),
            pl.BlockSpec((Ch, 9 * Ch), lambda n: (0, 0)),
            pl.BlockSpec((Ch, 1), lambda n: (0, 0)),
            pl.BlockSpec((C, Ch), lambda n: (0, 0)),
            pl.BlockSpec((C, 1), lambda n: (0, 0)),
        ],
        out_specs=pl.BlockSpec((C, BP), lambda n: (0, n)),
        scratch_shapes=[pltpu.VMEM((9 * Ch, BP), jnp.float32)],
        compiler_params=pltpu.CompilerParams(**cp_kwargs),
    )(x_packed, masks, w1, b1c, w2_flat, b2c, w3, b3c)

    out = out.reshape(C, Npad, P).transpose(1, 0, 2)[:N]
    return out.reshape(N, C, H, W)


def resblock_reference(x, w1, b1, w2, b2, w3, b3):
    """Pure-JAX NCHW reference for validation (cross-correlation, padding=SAME)."""
    C = x.shape[1]
    Ch = w1.shape[0]
    dn = ("NCHW", "OIHW", "NCHW")
    hp = lax.Precision.HIGHEST
    r = lax.conv_general_dilated(x, w1.reshape(Ch, C, 1, 1), (1, 1), "SAME",
                                 dimension_numbers=dn, precision=hp)
    r = jnp.maximum(r + b1.reshape(1, Ch, 1, 1), 0.0)
    r = lax.conv_general_dilated(r, w2, (1, 1), "SAME",
                                 dimension_numbers=dn, precision=hp)
    r = jnp.maximum(r + b2.reshape(1, Ch, 1, 1), 0.0)
    r = lax.conv_general_dilated(r, w3.reshape(C, Ch, 1, 1), (1, 1), "SAME",
                                 dimension_numbers=dn, precision=hp)
    return r + b3.reshape(1, C, 1, 1) + x


if __name__ == "__main__":
    key = jax.random.PRNGKey(0)
    # Small but packing-exercising shapes: N=8 -> B=4 images per step, 2 steps.
    N, C, H, W = 8, 32, 16, 16          # num_filters = 32 -> Ch = 16, H*W = 256
    Ch = C // 2

    k_x, k1, kb1, k2, kb2, k3, kb3 = jax.random.split(key, 7)
    x = jax.random.normal(k_x, (N, C, H, W), dtype=jnp.float32)

    # Parameters in the nn.Conv2d layouts (Cout, Cin[, Kh, Kw]) / (Cout,).
    w1 = jax.random.normal(k1, (Ch, C), dtype=jnp.float32) * 0.1
    b1 = jax.random.normal(kb1, (Ch,), dtype=jnp.float32) * 0.1
    w2 = jax.random.normal(k2, (Ch, Ch, 3, 3), dtype=jnp.float32) * 0.1
    b2 = jax.random.normal(kb2, (Ch,), dtype=jnp.float32) * 0.1
    w3 = jax.random.normal(k3, (C, Ch), dtype=jnp.float32) * 0.1
    b3 = jax.random.normal(kb3, (C,), dtype=jnp.float32) * 0.1

    out = jax.block_until_ready(resblock_pallas(x, w1, b1, w2, b2, w3, b3))

    ref = resblock_reference(x, w1, b1, w2, b2, w3, b3)
    assert out.shape == (N, C, H, W)
    assert jnp.allclose(out, ref, atol=1e-3, rtol=1e-3), "mismatch vs reference"

    print("KERNEL_OK")
</pallas_src>

<mosaic_0001>
module attributes {stable_mosaic.version = 11 : i64} {
  func.func @_resblock_kernel(%arg0: i32, %arg1: memref<32x1024xf32, #tpu.memory_space<vmem>>, %arg2: memref<9x1024xf32, #tpu.memory_space<vmem>>, %arg3: memref<16x32xf32, #tpu.memory_space<vmem>>, %arg4: memref<16x1xf32, #tpu.memory_space<vmem>>, %arg5: memref<16x144xf32, #tpu.memory_space<vmem>>, %arg6: memref<16x1xf32, #tpu.memory_space<vmem>>, %arg7: memref<32x16xf32, #tpu.memory_space<vmem>>, %arg8: memref<32x1xf32, #tpu.memory_space<vmem>>, %arg9: memref<32x1024xf32, #tpu.memory_space<vmem>>, %arg10: memref<144x1024xf32, #tpu.memory_space<vmem>>) attributes {dimension_semantics = [#tpu.dimension_semantics<parallel>], iteration_bounds = array<i64: 2>, scalar_prefetch = 0 : i64, scratch_operands = 1 : i64, tpu.core_type = #tpu.core_type<tc>, window_params = [{transform_indices = @transform_0, window_bounds = array<i64: 32, 1024>}, {pipeline_mode = #tpu.pipeline_mode<synchronous>, transform_indices = @transform_1, window_bounds = array<i64: 9, 1024>}, {pipeline_mode = #tpu.pipeline_mode<synchronous>, transform_indices = @transform_2, window_bounds = array<i64: 16, 32>}, {pipeline_mode = #tpu.pipeline_mode<synchronous>, transform_indices = @transform_3, window_bounds = array<i64: 16, 1>}, {pipeline_mode = #tpu.pipeline_mode<synchronous>, transform_indices = @transform_4, window_bounds = array<i64: 16, 144>}, {pipeline_mode = #tpu.pipeline_mode<synchronous>, transform_indices = @transform_5, window_bounds = array<i64: 16, 1>}, {pipeline_mode = #tpu.pipeline_mode<synchronous>, transform_indices = @transform_6, window_bounds = array<i64: 32, 16>}, {pipeline_mode = #tpu.pipeline_mode<synchronous>, transform_indices = @transform_7, window_bounds = array<i64: 32, 1>}, {transform_indices = @transform_8, window_bounds = array<i64: 32, 1024>}]} {
    %c0 = arith.constant 0 : index
    %c0_0 = arith.constant 0 : index
    %0 = vector.load %arg3[%c0, %c0_0] : memref<16x32xf32, #tpu.memory_space<vmem>>, vector<16x32xf32>
    %c0_1 = arith.constant 0 : index
    %c0_2 = arith.constant 0 : index
    %1 = vector.load %arg1[%c0_1, %c0_2] : memref<32x1024xf32, #tpu.memory_space<vmem>>, vector<32x1024xf32>
    %cst = arith.constant dense<0.000000e+00> : vector<16x1024xf32>
    %2 = tpu.matmul %0, %1, %cst {dimension_numbers = #tpu.dot_dimension_numbers<[1], [0], [0], [1], [0, 0, 1, 1], [], []>} : vector<16x32xf32>, vector<32x1024xf32>, vector<16x1024xf32> -> vector<16x1024xf32>
    %c0_3 = arith.constant 0 : index
    %c0_4 = arith.constant 0 : index
    %3 = vector.load %arg4[%c0_3, %c0_4] : memref<16x1xf32, #tpu.memory_space<vmem>>, vector<16x1xf32>
    %4 = vector.broadcast %3 : vector<16x1xf32> to vector<16x1024xf32>
    %5 = arith.addf %2, %4 : vector<16x1024xf32>
    %cst_5 = arith.constant 0.000000e+00 : f32
    %6 = vector.broadcast %cst_5 : f32 to vector<16x1024xf32>
    %7 = arith.maximumf %5, %6 : vector<16x1024xf32>
    %c17_i32 = arith.constant 17 : i32
    %8 = tpu.dynamic_rotate %7 by %c17_i32 dim 1 : vector<16x1024xf32>, i32 -> vector<16x1024xf32>
    %c0_6 = arith.constant 0 : index
    %c0_7 = arith.constant 0 : index
    %9 = vector.load %arg2[%c0_6, %c0_7] : memref<9x1024xf32, #tpu.memory_space<vmem>>, vector<1x1024xf32>
    %10 = vector.broadcast %9 : vector<1x1024xf32> to vector<16x1024xf32>
    %11 = arith.mulf %8, %10 : vector<16x1024xf32>
    %c0_8 = arith.constant 0 : index
    %c0_9 = arith.constant 0 : index
    %12 = vector.load %arg10[%c0_8, %c0_9] : memref<144x1024xf32, #tpu.memory_space<vmem>>, vector<16x1024xf32>
    tpu.vector_store %arg10[%c0_8, %c0_9], %11 {strides = array<i32>} : memref<144x1024xf32, #tpu.memory_space<vmem>>, vector<16x1024xf32>,
    %c16_i32 = arith.constant 16 : i32
    %13 = tpu.dynamic_rotate %7 by %c16_i32 dim 1 : vector<16x1024xf32>, i32 -> vector<16x1024xf32>
    %c1 = arith.constant 1 : index
    %c0_10 = arith.constant 0 : index
    %14 = vector.load %arg2[%c1, %c0_10] : memref<9x1024xf32, #tpu.memory_space<vmem>>, vector<1x1024xf32>
    %15 = vector.broadcast %14 : vector<1x1024xf32> to vector<16x1024xf32>
    %16 = arith.mulf %13, %15 : vector<16x1024xf32>
    %c16 = arith.constant 16 : index
    %c0_11 = arith.constant 0 : index
    %17 = vector.load %arg10[%c16, %c0_11] : memref<144x1024xf32, #tpu.memory_space<vmem>>, vector<16x1024xf32>
    tpu.vector_store %arg10[%c16, %c0_11], %16 {strides = array<i32>} : memref<144x1024xf32, #tpu.memory_space<vmem>>, vector<16x1024xf32>,
    %c15_i32 = arith.constant 15 : i32
    %18 = tpu.dynamic_rotate %7 by %c15_i32 dim 1 : vector<16x1024xf32>, i32 -> vector<16x1024xf32>
    %c2 = arith.constant 2 : index
    %c0_12 = arith.constant 0 : index
    %19 = vector.load %arg2[%c2, %c0_12] : memref<9x1024xf32, #tpu.memory_space<vmem>>, vector<1x1024xf32>
    %20 = vector.broadcast %19 : vector<1x1024xf32> to vector<16x1024xf32>
    %21 = arith.mulf %18, %20 : vector<16x1024xf32>
    %c32 = arith.constant 32 : index
    %c0_13 = arith.constant 0 : index
    %22 = vector.load %arg10[%c32, %c0_13] : memref<144x1024xf32, #tpu.memory_space<vmem>>, vector<16x1024xf32>
    tpu.vector_store %arg10[%c32, %c0_13], %21 {strides = array<i32>} : memref<144x1024xf32, #tpu.memory_space<vmem>>, vector<16x1024xf32>,
    %c1_i32 = arith.constant 1 : i32
    %23 = tpu.dynamic_rotate %7 by %c1_i32 dim 1 : vector<16x1024xf32>, i32 -> vector<16x1024xf32>
    %c3 = arith.constant 3 : index
    %c0_14 = arith.constant 0 : index
    %24 = vector.load %arg2[%c3, %c0_14] : memref<9x1024xf32, #tpu.memory_space<vmem>>, vector<1x1024xf32>
    %25 = vector.broadcast %24 : vector<1x1024xf32> to vector<16x1024xf32>
    %26 = arith.mulf %23, %25 : vector<16x1024xf32>
    %c48 = arith.constant 48 : index
    %c0_15 = arith.constant 0 : index
    %27 = vector.load %arg10[%c48, %c0_15] : memref<144x1024xf32, #tpu.memory_space<vmem>>, vector<16x1024xf32>
    tpu.vector_store %arg10[%c48, %c0_15], %26 {strides = array<i32>} : memref<144x1024xf32, #tpu.memory_space<vmem>>, vector<16x1024xf32>,
    %c4 = arith.constant 4 : index
    %c0_16 = arith.constant 0 : index
    %28 = vector.load %arg2[%c4, %c0_16] : memref<9x1024xf32, #tpu.memory_space<vmem>>, vector<1x1024xf32>
    %29 = vector.broadcast %28 : vector<1x1024xf32> to vector<16x1024xf32>
    %30 = arith.mulf %7, %29 : vector<16x1024xf32>
    %c64 = arith.constant 64 : index
    %c0_17 = arith.constant 0 : index
    %31 = vector.load %arg10[%c64, %c0_17] : memref<144x1024xf32, #tpu.memory_space<vmem>>, vector<16x1024xf32>
    tpu.vector_store %arg10[%c64, %c0_17], %30 {strides = array<i32>} : memref<144x1024xf32, #tpu.memory_space<vmem>>, vector<16x1024xf32>,
    %c1023_i32 = arith.constant 1023 : i32
    %32 = tpu.dynamic_rotate %7 by %c1023_i32 dim 1 : vector<16x1024xf32>, i32 -> vector<16x1024xf32>
    %c5 = arith.constant 5 : index
    %c0_18 = arith.constant 0 : index
    %33 = vector.load %arg2[%c5, %c0_18] : memref<9x1024xf32, #tpu.memory_space<vmem>>, vector<1x1024xf32>
    %34 = vector.broadcast %33 : vector<1x1024xf32> to vector<16x1024xf32>
    %35 = arith.mulf %32, %34 : vector<16x1024xf32>
    %c80 = arith.constant 80 : index
    %c0_19 = arith.constant 0 : index
    %36 = vector.load %arg10[%c80, %c0_19] : memref<144x1024xf32, #tpu.memory_space<vmem>>, vector<16x1024xf32>
    tpu.vector_store %arg10[%c80, %c0_19], %35 {strides = array<i32>} : memref<144x1024xf32, #tpu.memory_space<vmem>>, vector<16x1024xf32>,
    %c1009_i32 = arith.constant 1009 : i32
    %37 = tpu.dynamic_rotate %7 by %c1009_i32 dim 1 : vector<16x1024xf32>, i32 -> vector<16x1024xf32>
    %c6 = arith.constant 6 : index
    %c0_20 = arith.constant 0 : index
    %38 = vector.load %arg2[%c6, %c0_20] : memref<9x1024xf32, #tpu.memory_space<vmem>>, vector<1x1024xf32>
    %39 = vector.broadcast %38 : vector<1x1024xf32> to vector<16x1024xf32>
    %40 = arith.mulf %37, %39 : vector<16x1024xf32>
    %c96 = arith.constant 96 : index
    %c0_21 = arith.constant 0 : index
    %41 = vector.load %arg10[%c96, %c0_21] : memref<144x1024xf32, #tpu.memory_space<vmem>>, vector<16x1024xf32>
    tpu.vector_store %arg10[%c96, %c0_21], %40 {strides = array<i32>} : memref<144x1024xf32, #tpu.memory_space<vmem>>, vector<16x1024xf32>,
    %c1008_i32 = arith.constant 1008 : i32
    %42 = tpu.dynamic_rotate %7 by %c1008_i32 dim 1 : vector<16x1024xf32>, i32 -> vector<16x1024xf32>
    %c7 = arith.constant 7 : index
    %c0_22 = arith.constant 0 : index
    %43 = vector.load %arg2[%c7, %c0_22] : memref<9x1024xf32, #tpu.memory_space<vmem>>, vector<1x1024xf32>
    %44 = vector.broadcast %43 : vector<1x1024xf32> to vector<16x1024xf32>
    %45 = arith.mulf %42, %44 : vector<16x1024xf32>
    %c112 = arith.constant 112 : index
    %c0_23 = arith.constant 0 : index
    %46 = vector.load %arg10[%c112, %c0_23] : memref<144x1024xf32, #tpu.memory_space<vmem>>, vector<16x1024xf32>
    tpu.vector_store %arg10[%c112, %c0_23], %45 {strides = array<i32>} : memref<144x1024xf32, #tpu.memory_space<vmem>>, vector<16x1024xf32>,
    %c1007_i32 = arith.constant 1007 : i32
    %47 = tpu.dynamic_rotate %7 by %c1007_i32 dim 1 : vector<16x1024xf32>, i32 -> vector<16x1024xf32>
    %c8 = arith.constant 8 : index
    %c0_24 = arith.constant 0 : index
    %48 = vector.load %arg2[%c8, %c0_24] : memref<9x1024xf32, #tpu.memory_space<vmem>>, vector<1x1024xf32>
    %49 = vector.broadcast %48 : vector<1x1024xf32> to vector<16x1024xf32>
    %50 = arith.mulf %47, %49 : vector<16x1024xf32>
    %c128 = arith.constant 128 : index
    %c0_25 = arith.constant 0 : index
    %51 = vector.load %arg10[%c128, %c0_25] : memref<144x1024xf32, #tpu.memory_space<vmem>>, vector<16x1024xf32>
    tpu.vector_store %arg10[%c128, %c0_25], %50 {strides = array<i32>} : memref<144x1024xf32, #tpu.memory_space<vmem>>, vector<16x1024xf32>,
    %c0_26 = arith.constant 0 : index
    %c0_27 = arith.constant 0 : index
    %52 = vector.load %arg5[%c0_26, %c0_27] : memref<16x144xf32, #tpu.memory_space<vmem>>, vector<16x144xf32>
    %c0_28 = arith.constant 0 : index
    %c0_29 = arith.constant 0 : index
    %53 = vector.load %arg10[%c0_28, %c0_29] : memref<144x1024xf32, #tpu.memory_space<vmem>>, vector<144x1024xf32>
    %cst_30 = arith.constant dense<0.000000e+00> : vector<16x1024xf32>
    %54 = tpu.matmul %52, %53, %cst_30 {dimension_numbers = #tpu.dot_dimension_numbers<[1], [0], [0], [1], [0, 0, 1, 1], [], []>} : vector<16x144xf32>, vector<144x1024xf32>, vector<16x1024xf32> -> vector<16x1024xf32>
    %c0_31 = arith.constant 0 : index
    %c0_32 = arith.constant 0 : index
    %55 = vector.load %arg6[%c0_31, %c0_32] : memref<16x1xf32, #tpu.memory_space<vmem>>, vector<16x1xf32>
    %56 = vector.broadcast %55 : vector<16x1xf32> to vector<16x1024xf32>
    %57 = arith.addf %54, %56 : vector<16x1024xf32>
    %cst_33 = arith.constant 0.000000e+00 : f32
    %58 = vector.broadcast %cst_33 : f32 to vector<16x1024xf32>
    %59 = arith.maximumf %57, %58 : vector<16x1024xf32>
    %c0_34 = arith.constant 0 : index
    %c0_35 = arith.constant 0 : index
    %60 = vector.load %arg7[%c0_34, %c0_35] : memref<32x16xf32, #tpu.memory_space<vmem>>, vector<32x16xf32>
    %cst_36 = arith.constant dense<0.000000e+00> : vector<32x1024xf32>
    %61 = tpu.matmul %60, %59, %cst_36 {dimension_numbers = #tpu.dot_dimension_numbers<[1], [0], [0], [1], [0, 0, 1, 1], [], []>} : vector<32x16xf32>, vector<16x1024xf32>, vector<32x1024xf32> -> vector<32x1024xf32>
    %c0_37 = arith.constant 0 : index
    %c0_38 = arith.constant 0 : index
    %62 = vector.load %arg8[%c0_37, %c0_38] : memref<32x1xf32, #tpu.memory_space<vmem>>, vector<32x1xf32>
    %63 = vector.broadcast %62 : vector<32x1xf32> to vector<32x1024xf32>
    %64 = arith.addf %61, %63 : vector<32x1024xf32>
    %c0_39 = arith.constant 0 : index
    %c0_40 = arith.constant 0 : index
    %65 = vector.load %arg1[%c0_39, %c0_40] : memref<32x1024xf32, #tpu.memory_space<vmem>>, vector<32x1024xf32>
    %66 = arith.addf %64, %65 : vector<32x1024xf32>
    %c0_41 = arith.constant 0 : index
    %c0_42 = arith.constant 0 : index
    %67 = vector.load %arg9[%c0_41, %c0_42] : memref<32x1024xf32, #tpu.memory_space<vmem>>, vector<32x1024xf32>
    tpu.vector_store %arg9[%c0_41, %c0_42], %66 {strides = array<i32>} : memref<32x1024xf32, #tpu.memory_space<vmem>>, vector<32x1024xf32>,
    return
  }
  func.func @transform_0(%arg0: i32) -> (i32, i32) {
    %c0_i32 = arith.constant 0 : i32
    %c0_i32_0 = arith.constant 0 : i32
    return %c0_i32, %arg0 : i32, i32
  }
  func.func @transform_1(%arg0: i32) -> (i32, i32) {
    %c0_i32 = arith.constant 0 : i32
    %c0_i32_0 = arith.constant 0 : i32
    %c0_i32_1 = arith.constant 0 : i32
    return %c0_i32, %c0_i32_0 : i32, i32
  }
  func.func @transform_2(%arg0: i32) -> (i32, i32) {
    %c0_i32 = arith.constant 0 : i32
    %c0_i32_0 = arith.constant 0 : i32
    %c0_i32_1 = arith.constant 0 : i32
    return %c0_i32, %c0_i32_0 : i32, i32
  }
  func.func @transform_3(%arg0: i32) -> (i32, i32) {
    %c0_i32 = arith.constant 0 : i32
    %c0_i32_0 = arith.constant 0 : i32
    %c0_i32_1 = arith.constant 0 : i32
    return %c0_i32, %c0_i32_0 : i32, i32
  }
  func.func @transform_4(%arg0: i32) -> (i32, i32) {
    %c0_i32 = arith.constant 0 : i32
    %c0_i32_0 = arith.constant 0 : i32
    %c0_i32_1 = arith.constant 0 : i32
    return %c0_i32, %c0_i32_0 : i32, i32
  }
  func.func @transform_5(%arg0: i32) -> (i32, i32) {
    %c0_i32 = arith.constant 0 : i32
    %c0_i32_0 = arith.constant 0 : i32
    %c0_i32_1 = arith.constant 0 : i32
    return %c0_i32, %c0_i32_0 : i32, i32
  }
  func.func @transform_6(%arg0: i32) -> (i32, i32) {
    %c0_i32 = arith.constant 0 : i32
    %c0_i32_0 = arith.constant 0 : i32
    %c0_i32_1 = arith.constant 0 : i32
    return %c0_i32, %c0_i32_0 : i32, i32
  }
  func.func @transform_7(%arg0: i32) -> (i32, i32) {
    %c0_i32 = arith.constant 0 : i32
    %c0_i32_0 = arith.constant 0 : i32
    %c0_i32_1 = arith.constant 0 : i32
    return %c0_i32, %c0_i32_0 : i32, i32
  }
  func.func @transform_8(%arg0: i32) -> (i32, i32) {
    %c0_i32 = arith.constant 0 : i32
    %c0_i32_0 = arith.constant 0 : i32
    return %c0_i32, %arg0 : i32, i32
  }
}

</mosaic_0001>

<bundles_post_ra>
// kernel: tpu_custom_call.1
= control target key start
LH: loop header
LB: loop body
LE: loop exit
PB: predicated region body
PF: predicated region fallthrough
CT: control target
= control target key end

     0   :  { %13 = vsyncpa [#allocation4], 0  ;;  %s5166_s0 = inlined_call_operand.hbm [shape: f32[32,2048], index: 0, kind: input, shape index: {}]   ;;  %s5167_s1 = inlined_call_operand.hbm [shape: f32[9,1024], index: 1, kind: input, shape index: {}]   ;;  %s5168_s2 = inlined_call_operand.vmem [shape: f32[16,32], index: 2, kind: input, shape index: {}]   ;;  %s5169_s3 = inlined_call_operand.vmem [shape: f32[16,1], index: 3, kind: input, shape index: {}]   ;;  %s5170_s4 = inlined_call_operand.vmem [shape: f32[16,144], index: 4, kind: input, shape index: {}]   ;;  %s5171_s5 = inlined_call_operand.vmem [shape: f32[16,1], index: 5, kind: input, shape index: {}]   ;;  %s5172_s6 = inlined_call_operand.vmem [shape: f32[32,16], index: 6, kind: input, shape index: {}]   ;;  %s5173_s7 = inlined_call_operand.vmem [shape: f32[32,1], index: 7, kind: input, shape index: {}]   ;;  %s5174_s8 = inlined_call_operand.hbm [shape: f32[32,2048], index: 8, kind: output, shape index: {}]  }
   0x1   :  { %15 = vsyncpa [#allocation4 + $0x1], 0 }
   0x2   :  { %16 = vsyncpa [#allocation7], 0 }
   0x3   :  { %17 = vsyncpa [#allocation5], 0 }
   0x4   :  { %19 = vsyncpa [#allocation5 + $0x1], 0  ;;  %s3198_s27 = smov 0   ;;  %s3200_s28 = smov 0  }
   0x5   :  { %s3202_s29 = smov 0   ;;  %s3204_s30 = smov 0  }
   0x6 LB: > { %5284 = sst [smem:[#allocation12_spill]] %s3128_s29  ;;  %s3219_s9 = sadd.s32 4294967295, %s3132_s30   ;;  %s3132_s30 = sphi %s3204_s30, %s5554_s30   ;;  %s3128_s29 = sphi %s3202_s29, %s5556_s29   ;;  %s3124_s28 = sphi %s3200_s28, %s5558_s28   ;;  %s3120_s27 = sphi %s3198_s27, %s5557_s27  }
   0x7   : > { %s2884_s10 = sadd.s32 4294967294, %s3132_s30   ;;  %s3223_s11 = sadd.s32 1, %s3132_s30  }
   0x8   : > { %5285 = sst [smem:[#allocation13_spill]] %s3223_s11  ;;  %s32_s12 = sadd.s32 1, %s3128_s29 }
   0x9   : > { %s29_s13 = ssub.s32 %s3132_s30, %s3223_s11  ;;  %p39_p0 = scmp.ne.s32.totalorder %s3128_s29, %s3124_s28 }
   0xa   : > { %p30_p1 = scmp.eq.s32.totalorder %s29_s13, 0  ;;  %p40_p2 = scmp.eq.s32.totalorder %s3132_s30, 0 }
   0xb   : > { %p45_p3 = scmp.ne.s32.totalorder %s3124_s28, %s3120_s27  ;;  %p5182_p4 = scmp.eq.s32.totalorder %s3219_s9, 0 }
   0xc   : > { %s3235_s14 = scalar_select %p30_p1, %s3128_s29, %s32_s12  }
   0xd   : > { %p3237_p5 = por %p40_p2, %p39_p0  ;;  %p3243_p6 = por %p5182_p4, %p45_p3 }
   0xe   : > { %5286 = sst [smem:[#allocation14_spill]] %s3235_s14  ;;  %p216_p7 = scmp.eq.s32.totalorder %s3219_s9, 1 }
   0xf   : > { %s5288_s16 = scalar_select %p3243_p6, 1, 0 }
  0x10   : > { %p222_p8 = scmp.eq.s32.totalorder %s2884_s10, 1  ;;  %p2885_p9 = scmp.ge.s32.totalorder %s3132_s30, 1 }
  0x11   : > { %p229_p10 = scmp.lt.s32.totalorder %s3132_s30, 3  ;;  %p3250_p11 = por %p216_p7, %p39_p0 }
  0x12   : > { %p3254_p12 = por %p222_p8, %p45_p3  ;;  %s3134_s20 = smov [#allocation6]  }
  0x13   : > { %s5289_s17 = scalar_select %p3250_p11, 1, 0 }
  0x14   : > { %s5290_s18 = scalar_select %p3254_p12, 1, 0 }
  0x15   : > { %p3258_p13 = pnand %p2885_p9, %p229_p10  ;;  %s241_s21 = sshll.u32 %s3134_s20, 4  ;;  %s242_s21 = int_to_ptr.vmem [resolvable:$true] %s241_s21 }
  0x16   : > { %p2955_p3 = scmp.lt.s32.totalorder %s3132_s30, 2  ;;  %s273_s23 = sand.u32 1, %s3128_s29  }
  0x17   : > { %s5291_s19 = scalar_select %p3258_p13, 1, 0 }
  0x18   : > { %p2942_p1 = pneg %p3258_p13  ;;  %s3021_s24 = scalar_lea.vmem %s242_s21, 2048 }
  0x19   : > { %p3022_p8 = scmp.ne.s32.totalorder %s242_s21, %s3021_s24  ;;  %p3029_p12 = scmp.lt.s32.totalorder %s242_s21, %s242_s21 }
  0x1a   : > { %p3266_p2 = pnand %p2942_p1, %p5182_p4  ;;  %p3030_p11 = scmp.lt.s32.totalorder %s3021_s24, %s3021_s24 }
  0x1c   : > { %p3012_p7 = pneg %p3266_p2  ;;  %p3031_p6 = por %p3030_p11, %p3029_p12 }
  0x1e   : > { %p3024_p9 = pnand %p3022_p8, %p3012_p7 }
  0x20   : > { %p3025_p10 = pneg %p3024_p9 }
  0x22   : > { %p3032_p13 = pnand %p3031_p6, %p3025_p10 }
  0x24   : > { %3035 = shalt.err (!%p3032_p13)
}
  0x25   : > { %s5181_s25 = smov 1024   ;;  %s3136_s26 = smov 64  }
  0x26   : > { %2945 = dma.hbm_to_vmem [thread:$0]  (!%p3266_p2), %s5167_s1, 2048, %s242_s21, [#allocation7], %s5181_s25, %s5181_s25, %s3136_s26  }
  0x27   : > { %p3287_p1 = pnand %p2955_p3, %p3237_p5  ;;  %s2888_s20 = sshll.u32 %s273_s23, 8 }
  0x28   : > { %s2932_s24 = sshll.u32 %s3132_s30, 10  ;;  %s277_s11 = scalar_lea.vmem [#allocation3], %s2888_s20 }
  0x29   : > { %s3295_s22 = scalar_lea.hbm %s5166_s0, %s2932_s24  ;;  %s284_s10 = sshll.u32 %s277_s11, 4  ;;  %s3297_s10 = int_to_ptr.vmem [resolvable:$true] %s284_s10 }
  0x2a   : > { %s3299_s15 = scalar_lea.sflag [#allocation4], %s273_s23  ;;  %s3036_s21 = scalar_lea.hbm %s3295_s22, 4096 }
  0x2b   : > { %p3037_p5 = scmp.ne.s32.totalorder %s3295_s22, %s3036_s21  ;;  %p3038_p6 = pneg %p3287_p1 }
  0x2c   : > { %s3041_s29 = scalar_lea.hbm %s5166_s0, 8192  ;;  %p3042_p13 = scmp.lt.s32.totalorder %s3295_s22, %s5166_s0 }
  0x2d   : > { %p3039_p11 = pnand %p3038_p6, %p3037_p5  ;;  %p3043_p2 = scmp.lt.s32.totalorder %s3041_s29, %s3036_s21 }
  0x2f   : > { %p3040_p12 = pneg %p3039_p11  ;;  %p3044_p3 = por %p3043_p2, %p3042_p13 }
  0x31   : > { %p3045_p7 = pnand %p3044_p3, %p3040_p12 }
  0x33   : > { %3048 = shalt.err (!%p3045_p7)
}
  0x34   : > { %s3049_s11 = scalar_lea.vmem %s3297_s10, 4096  ;;  %s3137_s23 = smov [#allocation3]  }
  0x35   : > { %p3050_p8 = scmp.ne.s32.totalorder %s3297_s10, %s3049_s11  ;;  %s3054_s20 = sshll.u32 %s3137_s23, 4  ;;  %s3055_s20 = int_to_ptr.vmem [resolvable:$false] %s3054_s20 }
  0x36   : > { %s3056_s25 = scalar_lea.vmem %s3055_s20, 8192  ;;  %p3057_p5 = scmp.lt.s32.totalorder %s3297_s10, %s3055_s20 }
  0x37   : > { %p3052_p9 = pnand %p3050_p8, %p3038_p6  ;;  %p3058_p11 = scmp.lt.s32.totalorder %s3056_s25, %s3049_s11 }
  0x39   : > { %p3053_p10 = pneg %p3052_p9  ;;  %p3059_p0 = por %p3058_p11, %p3057_p5 }
  0x3b   : > { %p3060_p4 = pnand %p3059_p0, %p3053_p10 }
  0x3d   : > { %3063 = shalt.err (!%p3060_p4)
}
  0x3e   : > { %s3138_s21 = smov 2048   ;;  %s5294_s12 = smov 1024  }
  0x3f   : > { %2949 = dma.hbm_to_vmem [thread:$0]  (!%p3287_p1), %s3295_s22, 4096, %s3297_s10, %s3299_s15, %s3138_s21, %s5294_s12, %s3136_s26  }
  0x40   : > { %p5295_p6 = scmp.ne.s32.totalorder %s5291_s19, 0 }
  0x42   : > { %296 = sbr.rel (%p5295_p6) target bundleno = 1096 (0x448), region = 52 }
  0x47   : > { %s3325_s29 = sand.u32 1, %s3124_s28   ;;  %p5296_p4 = scmp.ne.s32.totalorder %s5288_s16, 0 }
  0x48   : > { %s2892_s14 = sshll.u32 %s3325_s29, 8  ;;  %s299_s24 = scalar_lea.sflag [#allocation4], %s3325_s29 }
  0x49   : > { %s3331_s13 = scalar_lea.vmem [#allocation3], %s2892_s14 }
  0x4a   : > { %3107 = dma.done.wait (%p5296_p4), %s299_s24, 4096  }
  0x4b   : > { %3109 = vsyncadd (%p5296_p4), %s299_s24, 4294963200  ;;  %p5297_p0 = scmp.eq.s32.totalorder %s3219_s9, 0 }
  0x4d   : > { %3111 = dma.done.wait (%p5297_p0), [#allocation7], 2048   ;;  %p5298_p1 = pmov %p5297_p0 }
  0x4e   : > { %v5183_v0 = vmov 0.0   ;;  %v3140_v1 = vmov 0   ;;  %v368_v2 = vld [vmem:[%s3331_s13 + $0xc8] sm:$0xff]  ;;  %v370_v3 = vld [vmem:[%s3331_s13 + $0xd8] sm:$0xff]  ;;  %v367_v4 = vld [vmem:[%s3331_s13 + $0xc0] sm:$0xff]  ;;  %vm387_vm0 = vcmask 261120   ;;  %v750_v38 = vlaneseq }
  0x4f   : > { %3113 = vsyncadd (%p5298_p1), [#allocation7], 4294965248  ;;  %458 = vmatprep.mubr.f32.mxu0 %v5183_v0  ;;  %535 = vmatprep.mubr.f32.mxu1 %v5183_v0  ;;  %v369_v5 = vld [vmem:[%s3331_s13 + $0xd0] sm:$0xff]  ;;  %v360_v6 = vld [vmem:[%s3331_s13 + $0x88] sm:$0xff]  ;;  %s3141_s20 = smov 112   ;;  %s3142_s25 = smov 113  }
  0x50   : > { %3007 = vset.pattern.permute.xlu0 %v3140_v1  ;;  %3008 = vset.pattern.permute.xlu1 %v3140_v1  ;;  %v362_v7 = vld [vmem:[%s3331_s13 + $0x98] sm:$0xff]  ;;  %v359_v8 = vld [vmem:[%s3331_s13 + $0x80] sm:$0xff]  ;;  %v361_v9 = vld [vmem:[%s3331_s13 + $0x90] sm:$0xff]  ;;  %v3402_v39 = vshrl.u32 %v750_v38, 7  ;;  %s3143_s21 = smov 127   ;;  %s3144_s12 = smov 111  }
  0x51   : > { %418 = vmatprep.subr.mxu0 %v368_v2  ;;  %495 = vmatprep.subr.mxu1 %v370_v3  ;;  %v352_v10 = vld [vmem:[%s3331_s13 + $0x48] sm:$0xff]  ;;  %v354_v11 = vld [vmem:[%s3331_s13 + $0x58] sm:$0xff]  ;;  %v351_v12 = vld [vmem:[%s3331_s13 + $0x40] sm:$0xff]  ;;  %s3145_s24 = smov 1   ;;  %s3146_s16 = smov 15   ;;  %vm1964_vm4 = vcmask 130048  }
  0x52   : > { %419 = vmatpush1.msra.mxu0 %v367_v4  ;;  %496 = vmatpush1.msra.mxu1 %v369_v5  ;;  %v353_v13 = vld [vmem:[%s3331_s13 + $0x50] sm:$0xff]  ;;  %v344_v14 = vld [vmem:[%s3331_s13 + $0x8] sm:$0xff]  ;;  %v346_v15 = vld [vmem:[%s3331_s13 + $0x18] sm:$0xff]  ;;  %v3405_v42 = vsub.s32 2, %v3402_v39  ;;  %v3410_v44 = vsub.s32 3, %v3402_v39  ;;  %v3421_v47 = vsub.s32 4, %v3402_v39 }
  0x53   : > { %420 = vmatprep.subr.mxu0 %v360_v6  ;;  %497 = vmatprep.subr.mxu1 %v362_v7  ;;  %v343_v16 = vld [vmem:[%s3331_s13] sm:$0xff]  ;;  %v345_v17 = vld [vmem:[%s3331_s13 + $0x10] sm:$0xff]  ;;  %v372_v19 = vld [vmem:[%s3331_s13 + $0xe8] sm:$0xff]  ;;  %v3424_v48 = vsub.s32 6, %v3402_v39  ;;  %v3427_v49 = vsub.s32 7, %v3402_v39  ;;  %v3430_v50 = vsub.s32 5, %v3402_v39 }
  0x54   : > { %421 = vmatpush1.msra.mxu0 %v359_v8  ;;  %498 = vmatpush1.msra.mxu1 %v361_v9  ;;  %v341_v18 = vld [vmem:[%s5168_s2] sm:$0xff]  ;;  %v374_v20 = vld [vmem:[%s3331_s13 + $0xf8] sm:$0xff]  ;;  %v373_v22 = vld [vmem:[%s3331_s13 + $0xf0] sm:$0xff]  ;;  %5301 = vst [vmem:[#allocation17_spill] sm:$0xff] %v3421_v47  ;;  %s3147_s19 = smov 16   ;;  %s3148_s26 = smov 17  }
  0x55   : > { %422 = vmatprep.subr.mxu0 %v352_v10  ;;  %499 = vmatprep.subr.mxu1 %v354_v11  ;;  %v371_v21 = vld [vmem:[%s3331_s13 + $0xe0] sm:$0xff]  ;;  %v364_v23 = vld [vmem:[%s3331_s13 + $0xa8] sm:$0xff]  ;;  %v366_v24 = vld [vmem:[%s3331_s13 + $0xb8] sm:$0xff]  ;;  %5302 = vst [vmem:[#allocation18_spill] sm:$0xff] %v3424_v48  ;;  %s5019_s23 = scalar_lea.vmem [#allocation8], %s2892_s14  ;;  %s2933_s14 = sshll.u32 %s3219_s9, 10 }
  0x56   : > { %423 = vmatpush1.msra.mxu0 %v351_v12  ;;  %500 = vmatpush1.msra.mxu1 %v353_v13  ;;  %v363_v25 = vld [vmem:[%s3331_s13 + $0xa0] sm:$0xff]  ;;  %v365_v26 = vld [vmem:[%s3331_s13 + $0xb0] sm:$0xff]  ;;  %v342_v27 = vld [vmem:[%s5168_s2 + $0x8] sm:$0xff]  ;;  %5303 = vst [vmem:[#allocation19_spill] sm:$0xff] %v3427_v49  ;;  %s5119_s9 = scalar_lea.hbm %s5174_s8, %s2933_s14  ;;  %p5551_p13 = scmp.ne.s32.totalorder %s5289_s17, 0 }
  0x57   : > { %424 = vmatprep.subr.mxu0 %v344_v14  ;;  %501 = vmatprep.subr.mxu1 %v346_v15  ;;  %v356_v28 = vld [vmem:[%s3331_s13 + $0x68] sm:$0xff]  ;;  %v358_v29 = vld [vmem:[%s3331_s13 + $0x78] sm:$0xff]  ;;  %v355_v30 = vld [vmem:[%s3331_s13 + $0x60] sm:$0xff]  ;;  %5304 = vst [vmem:[#allocation20_spill] sm:$0xff] %v3430_v50 }
  0x58   : > { %425 = vmatpush1.msra.mxu0 %v343_v16  ;;  %502 = vmatpush1.msra.mxu1 %v345_v17  ;;  %v357_v31 = vld [vmem:[%s3331_s13 + $0x70] sm:$0xff]  ;;  %v348_v32 = vld [vmem:[%s3331_s13 + $0x28] sm:$0xff]  ;;  %v350_v33 = vld [vmem:[%s3331_s13 + $0x38] sm:$0xff] }
  0x59   : > { %2895 = vmatmul.mubr.msk.f32.vlgmr.msra.gmra.mxu0 %vm387_vm0, %v341_v18  ;;  %2897 = vmatmul.mubr.msk.f32.vlgmr.msra.gmra.mxu1 %vm387_vm0, %v341_v18  ;;  %v347_v34 = vld [vmem:[%s3331_s13 + $0x20] sm:$0xff]  ;;  %v349_v35 = vld [vmem:[%s3331_s13 + $0x30] sm:$0xff]  ;;  %v376_v36 = vld [vmem:[%s5169_s3 + $0x8] sm:$0xff] }
  0x5a   : > { %572 = vmatprep.subr.mxu0 %v372_v19  ;;  %649 = vmatprep.subr.mxu1 %v374_v20  ;;  %v375_v37 = vld [vmem:[%s5169_s3] sm:$0xff] }
  0x5b   : > { %573 = vmatpush1.msra.mxu0 %v371_v21  ;;  %650 = vmatpush1.msra.mxu1 %v373_v22  ;;  %v1224_v40 = vld [vmem:[#allocation6 + $0x4] ss:$8 sm:$0xf] }
  0x5c   : > { %574 = vmatprep.subr.mxu0 %v364_v23  ;;  %651 = vmatprep.subr.mxu1 %v366_v24  ;;  %v1225_v41 = vld [vmem:[#allocation6 + $0x4] ss:$8 sm:$0xf0] }
  0x5d   : > { %464 = vmatprep.mubr.f32.mxu0 %v5183_v0  ;;  %541 = vmatprep.mubr.f32.mxu1 %v5183_v0  ;;  %v3407_v43 = vor.u32 %v1225_v41, %v1224_v40  ;;  %v3634_v40 = vand.u32 127, %v750_v38  ;;  %v896_v38 = vld [vmem:[#allocation6 + $0x1] ss:$8 sm:$0xf0] }
  0x5e   : > { %575 = vmatpush1.msra.mxu0 %v363_v25  ;;  %652 = vmatpush1.msra.mxu1 %v365_v26 }
  0x5f   : > { %2896 = vmatmul.mubr.msk.f32.gmra.mxu0 %vm387_vm0, %v342_v27  ;;  %2898 = vmatmul.mubr.msk.f32.gmra.mxu1 %vm387_vm0, %v342_v27  ;;  %v3414_v45 = vrot.slane %v3407_v43, %v3405_v42  ;;  %v3418_v46 = vrot.slane %v3407_v43, %v3410_v44  ;;  %v3434_v51 = vrot.slane %v3407_v43, %v3421_v47  ;;  %vm1003_vm1 = vcmp.lt.s32.totalorder %v3634_v40, 15 }
  0x60   : > { %576 = vmatprep.subr.mxu0 %v356_v28  ;;  %653 = vmatprep.subr.mxu1 %v358_v29  ;;  %v3438_v52 = vrot.slane %v3407_v43, %v3424_v48  ;;  %v3442_v53 = vrot.slane %v3407_v43, %v3430_v50  ;;  %v3446_v54 = vrot.slane %v3407_v43, %v3427_v49  ;;  %vm877_vm2 = vcmp.lt.s32.totalorder %v3634_v40, 16  ;;  %v1476_v48 = vld [vmem:[#allocation6 + $0x6] ss:$8 sm:$0xf] }
  0x61   : > { %577 = vmatpush1.msra.mxu0 %v355_v30  ;;  %654 = vmatpush1.msra.mxu1 %v357_v31  ;;  %5299 = vst [vmem:[#allocation15_spill] sm:$0xff] %v3414_v45  ;;  %5300 = vst [vmem:[#allocation16_spill] sm:$0xff] %v3418_v46  ;;  %v1021_v31 = vld [vmem:[#allocation6 + $0x2] ss:$8 sm:$0xf]  ;;  %vm752_vm3 = vcmp.lt.s32.totalorder %v3634_v40, 17 }
  0x62   : > { %578 = vmatprep.subr.mxu0 %v348_v32  ;;  %655 = vmatprep.subr.mxu1 %v350_v33  ;;  %5305 = vst [vmem:[#allocation21_spill] sm:$0xff] %v3434_v51  ;;  %5306 = vst [vmem:[#allocation22_spill] sm:$0xff] %v3438_v52  ;;  %v1022_v32 = vld [vmem:[#allocation6 + $0x2] ss:$8 sm:$0xf0]  ;;  %vm1710_vm5 = vcmp.lt.s32.totalorder %v3634_v40, 111 }
  0x63   : > { %579 = vmatpush1.msra.mxu0 %v347_v34  ;;  %612 = vmatprep.mubr.f32.mxu0 %v5183_v0  ;;  %5307 = vst [vmem:[#allocation23_spill] sm:$0xff] %v3442_v53  ;;  %5308 = vst [vmem:[#allocation24_spill] sm:$0xff] %v3446_v54  ;;  %v1148_v46 = vld [vmem:[#allocation6 + $0x3] ss:$8 sm:$0xf0]  ;;  %vm1584_vm6 = vcmp.lt.s32.totalorder %v3634_v40, 112 }
  0x64   : > { %656 = vmatpush1.msra.mxu1 %v349_v35  ;;  %689 = vmatprep.mubr.f32.mxu1 %v5183_v0  ;;  %v1477_v50 = vld [vmem:[#allocation6 + $0x6] ss:$8 sm:$0xf0]  ;;  %vm1129_vm7 = vcmp.lt.s32.totalorder %v3634_v40, 1  ;;  %vm1458_vm8 = vcmp.lt.s32.totalorder %v3634_v40, 113  ;;  %vm1332_vm9 = vcmp.lt.s32.totalorder %v3634_v40, 127 }
  0x65   : > { %2899 = vmatmul.mubr.msk.f32.vlgmr.msra.gmra.mxu0 %vm387_vm0, %v341_v18  ;;  %2901 = vmatmul.mubr.msk.f32.vlgmr.msra.gmra.mxu1 %vm387_vm0, %v341_v18  ;;  %v5550_v40 = vmov 0.0  }
  0x66   : > { %618 = vmatprep.mubr.f32.mxu0 %v5183_v0  ;;  %695 = vmatprep.mubr.f32.mxu1 %v5183_v0 }
  0x67   : > { %384 = vperm.xlu0 %3007, %v376_v36   ;;  %v3629_v36 = vor.u32 %v1022_v32, %v1021_v31 }
  0x69   : > { %2900 = vmatmul.mubr.msk.f32.gmra.mxu0 %vm387_vm0, %v342_v27  ;;  %2902 = vmatmul.mubr.msk.f32.gmra.mxu1 %vm387_vm0, %v342_v27  ;;  %5322 = vst [vmem:[#allocation38_spill] sm:$0xff] %v3629_v36 }
  0x6b   : > { %379 = vperm.xlu0 %3007, %v375_v37  }
  0xe2   : > { %v3448_v55 = vpop.permute.xlu0 %384 }
  0xe6   : > { %v3450_v56 = vpop.permute.xlu0 %379 }
 0x119   : > { %v460_v57 = vpop.f32.mrf.mxu0  ;;  %v537_v58 = vpop.f32.mrf.mxu1 }
 0x11a   : > { %v461_v59 = vadd.f32 %v460_v57, %v3450_v56  ;;  %v538_v60 = vadd.f32 %v537_v58, %v3450_v56 }
 0x11b   : > { %v462_v1 = vpop.f32.mrf.mxu0  ;;  %v539_v3 = vpop.f32.mrf.mxu1 }
 0x11c   : > { %v3454_v61 = vmax.f32 %v461_v59, 0.0  ;;  %v704_v62 = vmax.f32 %v538_v60, 0.0  ;;  %v463_v2 = vadd.f32 %v462_v1, %v3450_v56  ;;  %v540_v5 = vadd.f32 %v539_v3, %v3450_v56  ;;  %v895_v60 = vld [vmem:[#allocation6 + $0x1] ss:$8 sm:$0xf] }
 0x11d   : > { %v3647_v59 = vrot.slane %v3629_v36, %v3405_v42 }
 0x11e   : > { %1560 = vrot.lane.b32.xlu0 %v704_v62, %s3141_s20  ;;  %1552 = vrot.lane.b32.xlu1 %v3454_v61, %s3141_s20  ;;  %v3460_v63 = vmul.f32 %v3414_v45, %v704_v62  ;;  %v3472_v4 = vmax.f32 %v463_v2, 0.0  ;;  %v3478_v6 = vmax.f32 %v540_v5, 0.0 }
 0x11f   : > { %v466_v7 = vpop.f32.mrf.mxu0  ;;  %v543_v10 = vpop.f32.mrf.mxu1 }
 0x120   : > { %5309 = vst [vmem:[#allocation25_spill] sm:$0xff] %v3460_v63  ;;  %5310 = vst [vmem:[#allocation26_spill] sm:$0xff] %v3478_v6  ;;  %v467_v8 = vadd.f32 %v466_v7, %v3448_v55  ;;  %v544_v11 = vadd.f32 %v543_v10, %v3448_v55  ;;  %v3662_v7 = vor.u32 %v896_v38, %v895_v60 }
 0x121   : > { %v468_v13 = vpop.f32.mrf.mxu0  ;;  %v545_v14 = vpop.f32.mrf.mxu1 }
 0x122   : > { %1434 = vrot.lane.b32.xlu0 %v704_v62, %s3142_s25  ;;  %1426 = vrot.lane.b32.xlu1 %v3454_v61, %s3142_s25  ;;  %v3506_v9 = vmax.f32 %v467_v8, 0.0  ;;  %v3525_v12 = vmax.f32 %v544_v11, 0.0  ;;  %v469_v15 = vadd.f32 %v468_v13, %v3448_v55  ;;  %v546_v16 = vadd.f32 %v545_v14, %v3448_v55  ;;  %5328 = vst [vmem:[#allocation44_spill] sm:$0xff] %v3662_v7 }
 0x123   : > { %v3666_v8 = vrot.slane %v3629_v36, %v3410_v44  ;;  %v3905_v36 = vor.u32 %v1477_v50, %v1476_v48 }
 0x124   : > { %5311 = vst [vmem:[#allocation27_spill] sm:$0xff] %v3525_v12  ;;  %v3561_v17 = vmax.f32 %v469_v15, 0.0  ;;  %v3563_v18 = vmax.f32 %v546_v16, 0.0  ;;  %v3684_v16 = vrot.slane %v3662_v7, %v3405_v42 }
 0x125   : > { %v614_v21 = vpop.f32.mrf.mxu0  ;;  %v691_v30 = vpop.f32.mrf.mxu1  ;;  %5363 = vst [vmem:[#allocation79_spill] sm:$0xff] %v3905_v36 }
 0x126   : > { %1308 = vrot.lane.b32.xlu0 %v704_v62, %s3143_s21  ;;  %1300 = vrot.lane.b32.xlu1 %v3454_v61, %s3143_s21  ;;  %5312 = vst [vmem:[#allocation28_spill] sm:$0xff] %v3563_v18  ;;  %v615_v22 = vadd.f32 %v614_v21, %v3450_v56  ;;  %v692_v33 = vadd.f32 %v691_v30, %v3450_v56  ;;  %v770_v30 = vld [vmem:[#allocation6] ss:$8 sm:$0xf0] }
 0x127   : > { %v693_v58 = vpop.f32.mrf.mxu1  ;;  %v616_v14 = vpop.f32.mrf.mxu0 }
 0x128   : > { %v3602_v25 = vmax.f32 %v615_v22, 0.0  ;;  %v3631_v37 = vmax.f32 %v692_v33, 0.0  ;;  %v769_v22 = vld [vmem:[#allocation6] ss:$8 sm:$0xf]  ;;  %v617_v31 = vadd.f32 %v616_v14, %v3450_v56 }
 0x129   : > { %v3702_v38 = vor.u32 %v770_v30, %v769_v22  ;;  %v620_v14 = vpop.f32.mrf.mxu0  ;;  %v697_v0 = vpop.f32.mrf.mxu1 }
 0x12a   : > { %1686 = vrot.lane.b32.xlu0 %v704_v62, %s3144_s12  ;;  %1097 = vrot.lane.b32.xlu1 %v3454_v61, %s3145_s24  ;;  %5316 = vst [vmem:[#allocation32_spill] sm:$0xff] %v3602_v25  ;;  %5323 = vst [vmem:[#allocation39_spill] sm:$0xff] %v3631_v37 }
 0x12b   : > { %5335 = vst [vmem:[#allocation51_spill] sm:$0xff] %v3702_v38  ;;  %v3724_v22 = vrot.slane %v3702_v38, %v3405_v42 }
 0x12e   : > { %1101 = vrot.lane.b32.xlu0 %v3472_v4, %s3145_s24  ;;  %1105 = vrot.lane.b32.xlu1 %v704_v62, %s3145_s24 }
 0x132   : > { %1109 = vrot.lane.b32.xlu0 %v3478_v6, %s3145_s24  ;;  %971 = vrot.lane.b32.xlu1 %v3454_v61, %s3146_s16 }
 0x136   : > { %975 = vrot.lane.b32.xlu0 %v3472_v4, %s3146_s16  ;;  %979 = vrot.lane.b32.xlu1 %v704_v62, %s3146_s16 }
 0x13a   : > { %983 = vrot.lane.b32.xlu0 %v3478_v6, %s3146_s16  ;;  %845 = vrot.lane.b32.xlu1 %v3454_v61, %s3147_s19 }
 0x13e   : > { %849 = vrot.lane.b32.xlu0 %v3472_v4, %s3147_s19  ;;  %853 = vrot.lane.b32.xlu1 %v704_v62, %s3147_s19 }
 0x142   : > { %857 = vrot.lane.b32.xlu0 %v3478_v6, %s3147_s19  ;;  %718 = vrot.lane.b32.xlu1 %v3454_v61, %s3148_s26 }
 0x146   : > { %722 = vrot.lane.b32.xlu0 %v3472_v4, %s3148_s26  ;;  %726 = vrot.lane.b32.xlu1 %v704_v62, %s3148_s26  ;;  %v694_v62 = vadd.f32 %v693_v58, %v3450_v56  ;;  %v3706_v56 = vrot.slane %v3662_v7, %v3410_v44 }
 0x148   : > { %v3668_v10 = vmax.f32 %v694_v62, 0.0  ;;  %v3708_v62 = vmax.f32 %v617_v31, 0.0  ;;  %v621_v31 = vadd.f32 %v620_v14, %v3448_v55  ;;  %v3744_v14 = vrot.slane %v3702_v38, %v3410_v44 }
 0x14a   : > { %730 = vrot.lane.b32.xlu0 %v3478_v6, %s3148_s26  ;;  %1678 = vrot.lane.b32.xlu1 %v3454_v61, %s3144_s12  ;;  %5329 = vst [vmem:[#allocation45_spill] sm:$0xff] %v3668_v10  ;;  %5336 = vst [vmem:[#allocation52_spill] sm:$0xff] %v3708_v62 }
 0x14b   : > { %5342 = vst [vmem:[#allocation58_spill] sm:$0xff] %v3744_v14 }
 0x14e   : > { %1554 = vrot.lane.b32.xlu0 %v3506_v9, %s3141_s20  ;;  %1556 = vrot.lane.b32.xlu1 %v3472_v4, %s3141_s20 }
 0x152   : > { %1428 = vrot.lane.b32.xlu0 %v3506_v9, %s3142_s25  ;;  %1564 = vrot.lane.b32.xlu1 %v3478_v6, %s3141_s20 }
 0x156   : > { %1302 = vrot.lane.b32.xlu0 %v3506_v9, %s3143_s21  ;;  %1430 = vrot.lane.b32.xlu1 %v3472_v4, %s3142_s25 }
 0x15a   : > { %1099 = vrot.lane.b32.xlu0 %v3506_v9, %s3145_s24  ;;  %1438 = vrot.lane.b32.xlu1 %v3478_v6, %s3142_s25 }
 0x15e   : > { %1107 = vrot.lane.b32.xlu0 %v3525_v12, %s3145_s24  ;;  %1304 = vrot.lane.b32.xlu1 %v3472_v4, %s3143_s21 }
 0x162   : > { %973 = vrot.lane.b32.xlu0 %v3506_v9, %s3146_s16  ;;  %1312 = vrot.lane.b32.xlu1 %v3478_v6, %s3143_s21 }
 0x166   : > { %981 = vrot.lane.b32.xlu0 %v3525_v12, %s3146_s16  ;;  %1682 = vrot.lane.b32.xlu1 %v3472_v4, %s3144_s12 }
 0x16a   : > { %847 = vrot.lane.b32.xlu0 %v3506_v9, %s3147_s19  ;;  %1690 = vrot.lane.b32.xlu1 %v3478_v6, %s3144_s12 }
 0x16e   : > { %855 = vrot.lane.b32.xlu0 %v3525_v12, %s3147_s19  ;;  %1562 = vrot.lane.b32.xlu1 %v3525_v12, %s3141_s20 }
 0x172   : > { %720 = vrot.lane.b32.xlu0 %v3506_v9, %s3148_s26  ;;  %1436 = vrot.lane.b32.xlu1 %v3525_v12, %s3142_s25 }
 0x176   : > { %728 = vrot.lane.b32.xlu0 %v3525_v12, %s3148_s26  ;;  %1310 = vrot.lane.b32.xlu1 %v3525_v12, %s3143_s21 }
 0x17a   : > { %1680 = vrot.lane.b32.xlu0 %v3506_v9, %s3144_s12  ;;  %1688 = vrot.lane.b32.xlu1 %v3525_v12, %s3144_s12  ;;  %v1728_v12 = vld [vmem:[#allocation6 + $0x40] ss:$8 sm:$0xf] }
 0x17e   : > { %1566 = vrot.lane.b32.xlu0 %v3563_v18, %s3141_s20  ;;  %1558 = vrot.lane.b32.xlu1 %v3561_v17, %s3141_s20 }
 0x182   : > { %1432 = vrot.lane.b32.xlu0 %v3561_v17, %s3142_s25  ;;  %1103 = vrot.lane.b32.xlu1 %v3561_v17, %s3145_s24 }
 0x186   : > { %1440 = vrot.lane.b32.xlu0 %v3563_v18, %s3142_s25  ;;  %1111 = vrot.lane.b32.xlu1 %v3563_v18, %s3145_s24 }
 0x18a   : > { %1306 = vrot.lane.b32.xlu0 %v3561_v17, %s3143_s21  ;;  %977 = vrot.lane.b32.xlu1 %v3561_v17, %s3146_s16 }
 0x18e   : > { %1314 = vrot.lane.b32.xlu0 %v3563_v18, %s3143_s21  ;;  %985 = vrot.lane.b32.xlu1 %v3563_v18, %s3146_s16 }
 0x190   : > { %v3585_v19 = vpop.permute.xlu0 %1560  ;;  %v3587_v20 = vpop.permute.xlu1 %1552 }
 0x191   : > { %5313 = vst [vmem:[#allocation29_spill] sm:$0xff] %v3585_v19  ;;  %5314 = vst [vmem:[#allocation30_spill] sm:$0xff] %v3587_v20 }
 0x192   : > { %1684 = vrot.lane.b32.xlu0 %v3561_v17, %s3144_s12  ;;  %851 = vrot.lane.b32.xlu1 %v3561_v17, %s3147_s19 }
 0x194   : > { %v3594_v23 = vpop.permute.xlu0 %1434  ;;  %v3596_v24 = vpop.permute.xlu1 %1426 }
 0x195   : > { %5315 = vst [vmem:[#allocation31_spill] sm:$0xff] %v3596_v24 }
 0x196   : > { %1692 = vrot.lane.b32.xlu0 %v3563_v18, %s3144_s12  ;;  %859 = vrot.lane.b32.xlu1 %v3563_v18, %s3147_s19 }
 0x198   : > { %v3604_v26 = vpop.permute.xlu0 %1308  ;;  %v3606_v27 = vpop.permute.xlu1 %1300 }
 0x199   : > { %5317 = vst [vmem:[#allocation33_spill] sm:$0xff] %v3606_v27 }
 0x19a   : > { %1568 = vrot.lane.b32.xlu0 %v3602_v25, %s3141_s20  ;;  %724 = vrot.lane.b32.xlu1 %v3561_v17, %s3148_s26 }
 0x19c   : > { %v3612_v28 = vpop.permute.xlu0 %1686  ;;  %v3614_v29 = vpop.permute.xlu1 %1097 }
 0x19d   : > { %5318 = vst [vmem:[#allocation34_spill] sm:$0xff] %v3612_v28  ;;  %5319 = vst [vmem:[#allocation35_spill] sm:$0xff] %v3614_v29  ;;  %v1147_v29 = vld [vmem:[#allocation6 + $0x3] ss:$8 sm:$0xf] }
 0x19e   : > { %1442 = vrot.lane.b32.xlu0 %v3602_v25, %s3142_s25  ;;  %732 = vrot.lane.b32.xlu1 %v3563_v18, %s3148_s26  ;;  %v3879_v18 = vsub.s32 0, %v3402_v39 }
 0x1a0   : > { %v3621_v34 = vpop.permute.xlu0 %1101  ;;  %v3623_v35 = vpop.permute.xlu1 %1105 }
 0x1a1   : > { %5320 = vst [vmem:[#allocation36_spill] sm:$0xff] %v3621_v34  ;;  %5321 = vst [vmem:[#allocation37_spill] sm:$0xff] %v3623_v35 }
 0x1a2   : > { %1316 = vrot.lane.b32.xlu0 %v3602_v25, %s3143_s21  ;;  %1113 = vrot.lane.b32.xlu1 %v3602_v25, %s3145_s24 }
 0x1a4   : > { %v3636_v41 = vpop.permute.xlu0 %1109  ;;  %v3638_v57 = vpop.permute.xlu1 %971 }
 0x1a5   : > { %5324 = vst [vmem:[#allocation40_spill] sm:$0xff] %v3636_v41  ;;  %5325 = vst [vmem:[#allocation41_spill] sm:$0xff] %v3638_v57 }
 0x1a6   : > { %1694 = vrot.lane.b32.xlu0 %v3602_v25, %s3144_s12  ;;  %1121 = vrot.lane.b32.xlu1 %v3631_v37, %s3145_s24 }
 0x1a8   : > { %v3650_v1 = vpop.permute.xlu0 %975  ;;  %v980_v2 = vpop.permute.xlu1 %979 }
 0x1a9   : > { %5326 = vst [vmem:[#allocation42_spill] sm:$0xff] %v3650_v1  ;;  %v1014_v3 = vsel %vm1003_vm1, %v3650_v1, %v980_v2 }
 0x1aa   : > { %v3656_v5 = vmul.f32 %v3647_v59, %v1014_v3  ;;  %1576 = vrot.lane.b32.xlu0 %v3631_v37, %s3141_s20  ;;  %987 = vrot.lane.b32.xlu1 %v3602_v25, %s3146_s16 }
 0x1ac   : > { %5327 = vst [vmem:[#allocation43_spill] sm:$0xff] %v3656_v5  ;;  %v3670_v11 = vpop.permute.xlu0 %983  ;;  %v3672_v13 = vpop.permute.xlu1 %845 }
 0x1ad   : > { %5330 = vst [vmem:[#allocation46_spill] sm:$0xff] %v3670_v11  ;;  %5331 = vst [vmem:[#allocation47_spill] sm:$0xff] %v3672_v13  ;;  %v1012_v15 = vsel %vm1003_vm1, %v980_v2, %v3670_v11 }
 0x1ae   : > { %1450 = vrot.lane.b32.xlu0 %v3631_v37, %s3142_s25  ;;  %1125 = vrot.lane.b32.xlu1 %v3668_v10, %s3145_s24  ;;  %v3687_v21 = vmul.f32 %v3666_v8, %v1012_v15 }
 0x1b0   : > { %5332 = vst [vmem:[#allocation48_spill] sm:$0xff] %v3687_v21  ;;  %v3690_v32 = vpop.permute.xlu0 %849  ;;  %v854_v33 = vpop.permute.xlu1 %853 }
 0x1b1   : > { %5333 = vst [vmem:[#allocation49_spill] sm:$0xff] %v3690_v32  ;;  %v888_v58 = vsel %vm877_vm2, %v3690_v32, %v854_v33 }
 0x1b2   : > { %v3696_v60 = vmul.f32 %v3684_v16, %v888_v58  ;;  %1324 = vrot.lane.b32.xlu0 %v3631_v37, %s3143_s21  ;;  %999 = vrot.lane.b32.xlu1 %v3668_v10, %s3146_s16 }
 0x1b4   : > { %5334 = vst [vmem:[#allocation50_spill] sm:$0xff] %v3696_v60  ;;  %v3710_v2 = vpop.permute.xlu0 %857  ;;  %v3712_v3 = vpop.permute.xlu1 %718 }
 0x1b5   : > { %5337 = vst [vmem:[#allocation53_spill] sm:$0xff] %v3710_v2  ;;  %5338 = vst [vmem:[#allocation54_spill] sm:$0xff] %v3712_v3  ;;  %v886_v15 = vsel %vm877_vm2, %v854_v33, %v3710_v2  ;;  %v698_v2 = vadd.f32 %v697_v0, %v3448_v55 }
 0x1b6   : > { %1117 = vrot.lane.b32.xlu0 %v3708_v62, %s3145_s24  ;;  %873 = vrot.lane.b32.xlu1 %v3668_v10, %s3147_s19  ;;  %v3727_v30 = vmul.f32 %v3706_v56, %v886_v15  ;;  %v3746_v15 = vmax.f32 %v621_v31, 0.0 }
 0x1b7   : > { %v3763_v31 = vmax.f32 %v698_v2, 0.0 }
 0x1b8   : > { %5339 = vst [vmem:[#allocation55_spill] sm:$0xff] %v3727_v30  ;;  %v3730_v58 = vpop.permute.xlu0 %722  ;;  %v727_v33 = vpop.permute.xlu1 %726  ;;  %5343 = vst [vmem:[#allocation59_spill] sm:$0xff] %v3746_v15 }
 0x1b9   : > { %5340 = vst [vmem:[#allocation56_spill] sm:$0xff] %v3730_v58  ;;  %v763_v52 = vsel %vm752_vm3, %v3730_v58, %v727_v33  ;;  %5347 = vst [vmem:[#allocation63_spill] sm:$0xff] %v3763_v31 }
 0x1ba   : > { %v3736_v54 = vmul.f32 %v3724_v22, %v763_v52  ;;  %991 = vrot.lane.b32.xlu0 %v3708_v62, %s3146_s16  ;;  %746 = vrot.lane.b32.xlu1 %v3668_v10, %s3148_s26 }
 0x1bc   : > { %5341 = vst [vmem:[#allocation57_spill] sm:$0xff] %v3736_v54  ;;  %v3749_v51 = vpop.permute.xlu0 %730  ;;  %v3751_v53 = vpop.permute.xlu1 %1678 }
 0x1bd   : > { %5344 = vst [vmem:[#allocation60_spill] sm:$0xff] %v3749_v51  ;;  %5345 = vst [vmem:[#allocation61_spill] sm:$0xff] %v3751_v53  ;;  %v761_v52 = vsel %vm752_vm3, %v727_v33, %v3749_v51  ;;  %v1729_v53 = vld [vmem:[#allocation6 + $0x40] ss:$8 sm:$0xf0] }
 0x1be   : > { %1115 = vrot.lane.b32.xlu0 %v3746_v15, %s3145_s24  ;;  %1572 = vrot.lane.b32.xlu1 %v3708_v62, %s3141_s20  ;;  %v3761_v54 = vmul.f32 %v3744_v14, %v761_v52  ;;  %v3818_v3 = vor.u32 %v1729_v53, %v1728_v12 }
 0x1c0   : > { %5346 = vst [vmem:[#allocation62_spill] sm:$0xff] %v3761_v54  ;;  %v3765_v0 = vpop.permute.xlu0 %1554  ;;  %v3767_v60 = vpop.permute.xlu1 %1556  ;;  %5355 = vst [vmem:[#allocation71_spill] sm:$0xff] %v3818_v3 }
 0x1c1   : > { %5348 = vst [vmem:[#allocation64_spill] sm:$0xff] %v3765_v0  ;;  %v699_v54 = vpop.f32.mrf.mxu1  ;;  %v1595_v49 = vsel %vm1584_vm6, %v3767_v60, %v3585_v19 }
 0x1c2   : > { %1123 = vrot.lane.b32.xlu0 %v3763_v31, %s3145_s24  ;;  %1580 = vrot.lane.b32.xlu1 %v3668_v10, %s3141_s20  ;;  %v700_v30 = vadd.f32 %v699_v54, %v3448_v55 }
 0x1c4   : > { %v3773_v33 = vpop.permute.xlu0 %1428  ;;  %v3775_v51 = vpop.permute.xlu1 %1564  ;;  %v3798_v63 = vmax.f32 %v700_v30, 0.0 }
 0x1c5   : > { %5349 = vst [vmem:[#allocation65_spill] sm:$0xff] %v3773_v33  ;;  %5350 = vst [vmem:[#allocation66_spill] sm:$0xff] %v3775_v51  ;;  %v1805_v51 = vld [vmem:[%s5170_s4 + $0x8] sm:$0xff] }
 0x1c6   : > { %989 = vrot.lane.b32.xlu0 %v3746_v15, %s3146_s16  ;;  %1446 = vrot.lane.b32.xlu1 %v3708_v62, %s3142_s25  ;;  %5353 = vst [vmem:[#allocation69_spill] sm:$0xff] %v3798_v63 }
 0x1c7   : > { %2903 = vmatprep.mubr.msk.f32.mxu0 %vm1964_vm4, %v1805_v51  ;;  %2905 = vmatprep.mubr.msk.f32.mxu1 %vm1964_vm4, %v1805_v51 }
 0x1c8   : > { %v3781_v2 = vpop.permute.xlu0 %1302  ;;  %v3783_v52 = vpop.permute.xlu1 %1430 }
 0x1c9   : > { %5351 = vst [vmem:[#allocation67_spill] sm:$0xff] %v3781_v2 }
 0x1ca   : > { %997 = vrot.lane.b32.xlu0 %v3763_v31, %s3146_s16  ;;  %1454 = vrot.lane.b32.xlu1 %v3668_v10, %s3142_s25 }
 0x1cc   : > { %v3790_v5 = vpop.permute.xlu0 %1099  ;;  %v3792_v21 = vpop.permute.xlu1 %1438 }
 0x1cd   : > { %5352 = vst [vmem:[#allocation68_spill] sm:$0xff] %v3792_v21  ;;  %v622_v21 = vpop.f32.mrf.mxu0 }
 0x1ce   : > { %863 = vrot.lane.b32.xlu0 %v3746_v15, %s3147_s19  ;;  %1320 = vrot.lane.b32.xlu1 %v3708_v62, %s3143_s21  ;;  %v623_v53 = vadd.f32 %v622_v21, %v3448_v55 }
 0x1d0   : > { %v3800_v35 = vpop.permute.xlu0 %1107  ;;  %v3802_v6 = vpop.permute.xlu1 %1304  ;;  %v3852_v51 = vmax.f32 %v623_v53, 0.0  ;;  %v1602_v53 = vld [vmem:[#allocation6 + $0x7] ss:$8 sm:$0xf] }
 0x1d2   : > { %1127 = vrot.lane.b32.xlu0 %v3798_v63, %s3145_s24  ;;  %1328 = vrot.lane.b32.xlu1 %v3668_v10, %s3143_s21  ;;  %5359 = vst [vmem:[#allocation75_spill] sm:$0xff] %v3852_v51 }
 0x1d4   : > { %v3808_v54 = vpop.permute.xlu0 %973  ;;  %v3810_v45 = vpop.permute.xlu1 %1312 }
 0x1d5   : > { %5354 = vst [vmem:[#allocation70_spill] sm:$0xff] %v3810_v45  ;;  %v3828_v45 = vrot.slane %v3818_v3, %v3405_v42 }
 0x1d6   : > { %1001 = vrot.lane.b32.xlu0 %v3798_v63, %s3146_s16  ;;  %1570 = vrot.lane.b32.xlu1 %v3746_v15, %s3141_s20 }
 0x1d8   : > { %v3816_v30 = vpop.permute.xlu0 %981  ;;  %v3820_v58 = vpop.permute.xlu1 %1682 }
 0x1d9   : > { %5356 = vst [vmem:[#allocation72_spill] sm:$0xff] %v3820_v58 }
 0x1da   : > { %875 = vrot.lane.b32.xlu0 %v3798_v63, %s3147_s19  ;;  %1444 = vrot.lane.b32.xlu1 %v3746_v15, %s3142_s25 }
 0x1dc   : > { %v3837_v12 = vpop.permute.xlu0 %847  ;;  %v3839_v58 = vpop.permute.xlu1 %1690 }
 0x1dd   : > { %5357 = vst [vmem:[#allocation73_spill] sm:$0xff] %v3839_v58  ;;  %v1719_v13 = vsel %vm1710_vm5, %v3612_v28, %v3839_v58 }
 0x1de   : > { %v3846_v32 = vmul.f32 %v3828_v45, %v1719_v13  ;;  %748 = vrot.lane.b32.xlu0 %v3798_v63, %s3148_s26  ;;  %1318 = vrot.lane.b32.xlu1 %v3746_v15, %s3143_s21 }
 0x1e0   : > { %5358 = vst [vmem:[#allocation74_spill] sm:$0xff] %v3846_v32  ;;  %v3854_v55 = vpop.permute.xlu0 %855  ;;  %v1563_v21 = vpop.permute.xlu1 %1562  ;;  %v1603_v32 = vld [vmem:[#allocation6 + $0x7] ss:$8 sm:$0xf0] }
 0x1e1   : > { %v3876_v34 = vor.u32 %v1603_v32, %v1602_v53  ;;  %v3891_v32 = vsub.s32 1, %v3402_v39  ;;  %v3893_v53 = vor.u32 %v1148_v46, %v1147_v29  ;;  %v1597_v29 = vsel %vm1584_vm6, %v3587_v20, %v3767_v60  ;;  %v1350_v20 = vld [vmem:[#allocation6 + $0x5] ss:$8 sm:$0xf] }
 0x1e2   : > { %1574 = vrot.lane.b32.xlu0 %v3852_v51, %s3141_s20  ;;  %995 = vrot.lane.b32.xlu1 %v3631_v37, %s3146_s16 }
 0x1e3   : > { %5360 = vst [vmem:[#allocation76_spill] sm:$0xff] %v3876_v34  ;;  %v1609_v10 = vrot.slane %v3876_v34, %v3879_v18  ;;  %v3903_v11 = vrot.slane %v3876_v34, %v3405_v42  ;;  %v1613_v39 = vrot.slane %v3876_v34, %v3891_v32  ;;  %v3934_v60 = vrot.slane %v3893_v53, %v3405_v42 }
 0x1e4   : > { %v3860_v28 = vpop.permute.xlu0 %720  ;;  %v3862_v13 = vpop.permute.xlu1 %1436 }
 0x1e5   : > { %5362 = vst [vmem:[#allocation78_spill] sm:$0xff] %v3903_v11  ;;  %5366 = vst [vmem:[#allocation82_spill] sm:$0xff] %v3934_v60 }
 0x1e6   : > { %1582 = vrot.lane.b32.xlu0 %v3798_v63, %s3141_s20  ;;  %1696 = vrot.lane.b32.xlu1 %v3746_v15, %s3144_s12 }
 0x1e8   : > { %v3868_v57 = vpop.permute.xlu0 %728  ;;  %v3870_v1 = vpop.permute.xlu1 %1310 }
 0x1ea   : > { %1448 = vrot.lane.b32.xlu0 %v3852_v51, %s3142_s25  ;;  %1578 = vrot.lane.b32.xlu1 %v3763_v31, %s3141_s20  ;;  %s2801_s20 = sshll.u32 %s5019_s23, 4  ;;  %s5121_s20 = int_to_ptr.vmem [resolvable:$true] %s2801_s20 }
 0x1ec   : > { %v3882_v38 = vpop.permute.xlu0 %1680  ;;  %v3884_v7 = vpop.permute.xlu1 %1688 }
 0x1ed   : > { %5361 = vst [vmem:[#allocation77_spill] sm:$0xff] %v3882_v38 }
 0x1ee   : > { %1456 = vrot.lane.b32.xlu0 %v3798_v63, %s3142_s25  ;;  %1452 = vrot.lane.b32.xlu1 %v3763_v31, %s3142_s25 }
 0x1f0   : > { %v3907_v58 = vpop.permute.xlu0 %1566  ;;  %v1559_v46 = vpop.permute.xlu1 %1558 }
 0x1f1   : > { %5364 = vst [vmem:[#allocation80_spill] sm:$0xff] %v3907_v58  ;;  %v1594_v19 = vsel %vm1584_vm6, %v1563_v21, %v3907_v58  ;;  %v1596_v3 = vsel %vm1584_vm6, %v1559_v46, %v1563_v21  ;;  %v1598_v48 = vsel %vm1584_vm6, %v3765_v0, %v1559_v46  ;;  %v1646_v21 = vmul.f32 %v1609_v10, %v1597_v29  ;;  %v1351_v0 = vld [vmem:[#allocation6 + $0x5] ss:$8 sm:$0xf0] }
 0x1f2   : > { %v3924_v50 = vmul.f32 %v3903_v11, %v1594_v19  ;;  %v1654_v34 = vmul.f32 %v1609_v10, %v1598_v48  ;;  %v1655_v41 = vmul.f32 %v1613_v39, %v1596_v3  ;;  %1322 = vrot.lane.b32.xlu0 %v3852_v51, %s3143_s21  ;;  %1326 = vrot.lane.b32.xlu1 %v3763_v31, %s3143_s21 }
 0x1f3   : > { %v1483_v19 = vrot.slane %v3905_v36, %v3879_v18  ;;  %v1487_v3 = vrot.slane %v3905_v36, %v3891_v32  ;;  %v1647_v11 = vmul.f32 %v1613_v39, %v1595_v49  ;;  %v3969_v49 = vrot.slane %v3905_v36, %v3405_v42 }
 0x1f4   : > { %5365 = vst [vmem:[#allocation81_spill] sm:$0xff] %v3924_v50  ;;  %v1433_v46 = vpop.permute.xlu0 %1432  ;;  %1971 = vmatprep.subr.mxu0 %v1655_v41  ;;  %v3940_v48 = vpop.permute.xlu1 %1103  ;;  %v1469_v41 = vsel %vm1458_vm8, %v3783_v52, %v3594_v23 }
 0x1f5   : > { %v1470_v50 = vsel %vm1458_vm8, %v1433_v46, %v3862_v13  ;;  %v1472_v10 = vsel %vm1458_vm8, %v3773_v33, %v1433_v46  ;;  %v1141_v29 = vsel %vm1129_vm7, %v3940_v48, %v3800_v35  ;;  %1972 = vmatpush1.msra.mxu0 %v1654_v34  ;;  %v1471_v46 = vsel %vm1458_vm8, %v3596_v24, %v3783_v52 }
 0x1f6   : > { %v1528_v58 = vmul.f32 %v1483_v19, %v1472_v10  ;;  %v1529_v47 = vmul.f32 %v1487_v3, %v1470_v50  ;;  %v3957_v14 = vmul.f32 %v3934_v60, %v1141_v29  ;;  %1330 = vrot.lane.b32.xlu0 %v3798_v63, %s3143_s21  ;;  %1119 = vrot.lane.b32.xlu1 %v3852_v51, %s3145_s24  ;;  %s2788_s24 = scalar_lea.sflag [#allocation5], %s3325_s29 }
 0x1f7   : > { %1973 = vmatprep.subr.mxu0 %v1647_v11  ;;  %v3971_v34 = vor.u32 %v1351_v0, %v1350_v20  ;;  %v3977_v50 = vrot.slane %v3893_v53, %v3410_v44  ;;  %v1521_v0 = vmul.f32 %v1487_v3, %v1469_v41  ;;  %v1520_v52 = vmul.f32 %v1483_v19, %v1471_v46 }
 0x1f8   : > { %5367 = vst [vmem:[#allocation83_spill] sm:$0xff] %v3957_v14  ;;  %1974 = vmatpush1.msra.mxu0 %v1646_v21  ;;  %v3973_v39 = vpop.permute.xlu0 %1440  ;;  %v3979_v10 = vpop.permute.xlu1 %1111 }
 0x1f9   : > { %5368 = vst [vmem:[#allocation84_spill] sm:$0xff] %v3971_v34  ;;  %5369 = vst [vmem:[#allocation85_spill] sm:$0xff] %v3977_v50  ;;  %v1468_v11 = vsel %vm1458_vm8, %v3862_v13, %v3973_v39  ;;  %1975 = vmatprep.subr.mxu0 %v1529_v47  ;;  %v1139_v20 = vsel %vm1129_vm7, %v3800_v35, %v3979_v10  ;;  %v1357_v47 = vrot.slane %v3971_v34, %v3879_v18 }
 0x1fa   : > { %v3991_v21 = vmul.f32 %v3969_v49, %v1468_v11  ;;  %v3994_v29 = vmul.f32 %v3977_v50, %v1139_v20  ;;  %1976 = vmatpush1.msra.mxu0 %v1528_v58  ;;  %871 = vrot.lane.b32.xlu0 %v3763_v31, %s3147_s19  ;;  %v1343_v35 = vsel %vm1332_vm9, %v3802_v6, %v3604_v26 }
 0x1fb   : > { %993 = vrot.lane.b32.xlu1 %v3852_v51, %s3146_s16  ;;  %1977 = vmatprep.subr.mxu0 %v1521_v0  ;;  %v1361_v13 = vrot.slane %v3971_v34, %v3891_v32  ;;  %v1345_v20 = vsel %vm1332_vm9, %v3606_v27, %v3802_v6  ;;  %s3149_s16 = smov [#allocation8]  }
 0x1fc   : > { %5370 = vst [vmem:[#allocation86_spill] sm:$0xff] %v3994_v29  ;;  %1978 = vmatpush1.msra.mxu0 %v1520_v52  ;;  %v1307_v58 = vpop.permute.xlu0 %1306  ;;  %v978_v19 = vpop.permute.xlu1 %977 }
 0x1fd   : > { %v1344_v3 = vsel %vm1332_vm9, %v1307_v58, %v3870_v1  ;;  %v1346_v41 = vsel %vm1332_vm9, %v3781_v2, %v1307_v58  ;;  %v1015_v46 = vsel %vm1003_vm1, %v978_v19, %v3816_v30  ;;  %v4020_v11 = vsel %vm1003_vm1, %v3808_v54, %v978_v19 }
 0x1fe   : > { %v1402_v0 = vmul.f32 %v1357_v47, %v1346_v41  ;;  %v1403_v52 = vmul.f32 %v1361_v13, %v1344_v3  ;;  %v4027_v33 = vmul.f32 %v3647_v59, %v1015_v46  ;;  %865 = vrot.lane.b32.xlu0 %v3708_v62, %s3147_s19  ;;  %v4035_v58 = vrot.slane %v3971_v34, %v3405_v42 }
 0x1ff   : > { %867 = vrot.lane.b32.xlu1 %v3852_v51, %s3147_s19  ;;  %v1395_v6 = vmul.f32 %v1361_v13, %v1343_v35  ;;  %v1235_v59 = vrot.slane %v3407_v43, %v3891_v32  ;;  %v1394_v3 = vmul.f32 %v1357_v47, %v1345_v20  ;;  %v1231_v46 = vrot.slane %v3407_v43, %v3879_v18 }
 0x200   : > { %5371 = vst [vmem:[#allocation87_spill] sm:$0xff] %v4027_v33  ;;  %v4037_v19 = vpop.permute.xlu0 %1314  ;;  %1979 = vmatprep.subr.mxu0 %v1403_v52  ;;  %v4039_v2 = vpop.permute.xlu1 %985  ;;  %v4067_v43 = vrot.slane %v3893_v53, %v3891_v32 }
 0x201   : > { %v1342_v41 = vsel %vm1332_vm9, %v3870_v1, %v4037_v19  ;;  %v1013_v42 = vsel %vm1003_vm1, %v3816_v30, %v4039_v2  ;;  %1980 = vmatpush1.msra.mxu0 %v1402_v0  ;;  %v1277_v1 = vmul.f32 %v1235_v59, %v3561_v17  ;;  %v1276_v30 = vmul.f32 %v1231_v46, %v3506_v9 }
 0x202   : > { %v4054_v35 = vmul.f32 %v4035_v58, %v1342_v41  ;;  %v4057_v13 = vmul.f32 %v3666_v8, %v1013_v42  ;;  %736 = vrot.lane.b32.xlu0 %v3746_v15, %s3148_s26  ;;  %1981 = vmatprep.subr.mxu0 %v1395_v6  ;;  %v1143_v8 = vsel %vm1129_vm7, %v3790_v5, %v3940_v48  ;;  %v2301_v15 = vld [vmem:[%s5173_s7 + $0x10] sm:$0xff] }
 0x203   : > { %861 = vrot.lane.b32.xlu1 %v3602_v25, %s3147_s19  ;;  %1982 = vmatpush1.msra.mxu0 %v1394_v3  ;;  %v1269_v17 = vmul.f32 %v1235_v59, %v3472_v4  ;;  %v1268_v6 = vmul.f32 %v1231_v46, %v3454_v61  ;;  %v1200_v59 = vmul.f32 %v4067_v43, %v1143_v8 }
 0x204   : > { %5372 = vst [vmem:[#allocation88_spill] sm:$0xff] %v4057_v13  ;;  %v1685_v47 = vpop.permute.xlu0 %1684  ;;  %1983 = vmatprep.subr.mxu0 %v1277_v1  ;;  %v852_v20 = vpop.permute.xlu1 %851 }
 0x205   : > { %v4077_v0 = vsel %vm1710_vm5, %v1685_v47, %v3884_v7  ;;  %v4082_v9 = vsel %vm1710_vm5, %v3882_v38, %v1685_v47  ;;  %v889_v52 = vsel %vm877_vm2, %v852_v20, %v3854_v55  ;;  %v4090_v48 = vsel %vm877_vm2, %v3837_v12, %v852_v20  ;;  %1984 = vmatpush1.msra.mxu0 %v1276_v30  ;;  %v5379_v20 = vld [vmem:[#allocation58_spill] sm:$0xff] }
 0x206   : > { %v4093_v4 = vmul.f32 %v3684_v16, %v889_v52  ;;  %744 = vrot.lane.b32.xlu0 %v3763_v31, %s3148_s26  ;;  %1985 = vmatprep.subr.mxu0 %v1269_v17 }
 0x207   : > { %869 = vrot.lane.b32.xlu1 %v3631_v37, %s3147_s19  ;;  %1986 = vmatpush1.msra.mxu0 %v1268_v6 }
 0x208   : > { %5373 = vst [vmem:[#allocation89_spill] sm:$0xff] %v4093_v4  ;;  %v4101_v3 = vpop.permute.xlu0 %1692  ;;  %v4103_v41 = vpop.permute.xlu1 %859  ;;  %1987 = vmatprep.subr.mxu0 %v1200_v59  ;;  %v5397_v4 = vld [vmem:[#allocation18_spill] sm:$0xff] }
 0x209   : > { %5374 = vst [vmem:[#allocation90_spill] sm:$0xff] %v4101_v3  ;;  %v1720_v16 = vsel %vm1710_vm5, %v3884_v7, %v4101_v3  ;;  %v887_v61 = vsel %vm877_vm2, %v3854_v55, %v4103_v41 }
 0x20a   : > { %v4114_v42 = vmul.f32 %v3828_v45, %v1720_v16  ;;  %v4117_v46 = vmul.f32 %v3706_v56, %v887_v61  ;;  %738 = vrot.lane.b32.xlu0 %v3708_v62, %s3148_s26  ;;  %v5382_v16 = vld [vmem:[#allocation40_spill] sm:$0xff] }
 0x20b   : > { %740 = vrot.lane.b32.xlu1 %v3852_v51, %s3148_s26 }
 0x20c   : > { %5375 = vst [vmem:[#allocation91_spill] sm:$0xff] %v4114_v42  ;;  %5376 = vst [vmem:[#allocation92_spill] sm:$0xff] %v4117_v46  ;;  %v4123_v1 = vpop.permute.xlu0 %1568  ;;  %v725_v7 = vpop.permute.xlu1 %724  ;;  %v5390_v42 = vld [vmem:[#allocation46_spill] sm:$0xff]  ;;  %v4229_v46 = vrot.slane %v3893_v53, %v5397_v4 }
 0x20d   : > { %v764_v55 = vsel %vm752_vm3, %v725_v7, %v3868_v57  ;;  %v4131_v45 = vsel %vm752_vm3, %v3860_v28, %v725_v7  ;;  %v5384_v7 = vld [vmem:[#allocation71_spill] sm:$0xff] }
 0x20e   : > { %v4134_v56 = vmul.f32 %v3724_v22, %v764_v55  ;;  %1700 = vrot.lane.b32.xlu0 %v3852_v51, %s3144_s12  ;;  %v5381_v22 = vld [vmem:[#allocation17_spill] sm:$0xff]  ;;  %v4168_v55 = vrot.slane %v5384_v7, %v3410_v44  ;;  %5398 = vst [vmem:[#allocation18_spill] sm:$0xff] %v4229_v46 }
 0x20f   : > { %734 = vrot.lane.b32.xlu1 %v3602_v25, %s3148_s26  ;;  %v1170_v52 = vrot.slane %v3893_v53, %v5381_v22  ;;  %v2300_v25 = vld [vmem:[%s5173_s7 + $0x8] sm:$0xff] }
 0x210   : > { %5377 = vst [vmem:[#allocation93_spill] sm:$0xff] %v4134_v56  ;;  %v4140_v30 = vpop.permute.xlu0 %1442  ;;  %v4142_v8 = vpop.permute.xlu1 %732  ;;  %5385 = vst [vmem:[#allocation95_spill] sm:$0xff] %v4168_v55 }
 0x211   : > { %5378 = vst [vmem:[#allocation94_spill] sm:$0xff] %v4142_v8  ;;  %v762_v47 = vsel %vm752_vm3, %v3868_v57, %v4142_v8  ;;  %v5389_v8 = vld [vmem:[#allocation38_spill] sm:$0xff] }
 0x212   : > { %v4149_v17 = vmul.f32 %v5379_v20, %v762_v47  ;;  %1708 = vrot.lane.b32.xlu0 %v3798_v63, %s3144_s12  ;;  %v1953_v47 = vld [vmem:[%s5171_s5 + $0x8] sm:$0xff] }
 0x213   : > { %742 = vrot.lane.b32.xlu1 %v3631_v37, %s3148_s26 }
 0x214   : > { %5380 = vst [vmem:[#allocation58_spill] sm:$0xff] %v4149_v17  ;;  %v4157_v6 = vpop.permute.xlu0 %1316  ;;  %v1114_v59 = vpop.permute.xlu1 %1113 }
 0x215   : > { %v1136_v61 = vsel %vm1129_vm7, %v5382_v16, %v1114_v59 }
 0x216   : > { %v4162_v57 = vmul.f32 %v1170_v52, %v1136_v61  ;;  %1702 = vrot.lane.b32.xlu0 %v3631_v37, %s3144_s12  ;;  %v5387_v61 = vld [vmem:[#allocation73_spill] sm:$0xff] }
 0x217   : > { %1704 = vrot.lane.b32.xlu1 %v3763_v31, %s3144_s12  ;;  %v2299_v31 = vld [vmem:[%s5173_s7] sm:$0xff] }
 0x218   : > { %5383 = vst [vmem:[#allocation40_spill] sm:$0xff] %v4162_v57  ;;  %v4175_v20 = vpop.permute.xlu0 %1694  ;;  %v1122_v38 = vpop.permute.xlu1 %1121  ;;  %v1044_v57 = vrot.slane %v5389_v8, %v5381_v22 }
 0x219   : > { %5386 = vst [vmem:[#allocation96_spill] sm:$0xff] %v4175_v20  ;;  %v1717_v63 = vsel %vm1710_vm5, %v5387_v61, %v4175_v20 }
 0x21a   : > { %v4182_v37 = vmul.f32 %v4168_v55, %v1717_v63  ;;  %1961 = vperm.xlu0 %3007, %v1953_v47   ;;  %v5392_v63 = vld [vmem:[#allocation19_spill] sm:$0xff] }
 0x21b   : > { %1698 = vrot.lane.b32.xlu1 %v3708_v62, %s3144_s12  ;;  %v4198_v47 = vrot.slane %v3893_v53, %v5392_v63  ;;  %v5395_v62 = vld [vmem:[#allocation20_spill] sm:$0xff] }
 0x21c   : > { %5388 = vst [vmem:[#allocation73_spill] sm:$0xff] %v4182_v37  ;;  %v1577_v27 = vpop.permute.xlu0 %1576  ;;  %v988_v24 = vpop.permute.xlu1 %987  ;;  %v5393_v37 = vld [vmem:[#allocation45_spill] sm:$0xff]  ;;  %v4225_v17 = vrot.slane %v3893_v53, %v5395_v62 }
 0x21d   : > { %v1010_v61 = vsel %vm1003_vm1, %v5390_v42, %v988_v24  ;;  %v1952_v42 = vld [vmem:[%s5171_s5] sm:$0xff] }
 0x21e   : > { %v4194_v20 = vmul.f32 %v1044_v57, %v1010_v61  ;;  %2305 = vperm.xlu0 %3007, %v2299_v31   ;;  %5396 = vst [vmem:[#allocation19_spill] sm:$0xff] %v4225_v17 }
 0x21f   : > { %1706 = vrot.lane.b32.xlu1 %v5393_v37, %s3144_s12  ;;  %s3068_s12 = sshll.u32 %s3149_s16, 4  ;;  %s3069_s12 = int_to_ptr.vmem [resolvable:$false] %s3068_s12 }
 0x220   : > { %5391 = vst [vmem:[#allocation38_spill] sm:$0xff] %v4194_v20  ;;  %v1451_v51 = vpop.permute.xlu0 %1450  ;;  %v4205_v56 = vpop.permute.xlu1 %1125  ;;  %s3070_s19 = scalar_lea.vmem %s3069_s12, 8192  ;;  %p3071_p7 = scmp.lt.s32.totalorder %s5121_s20, %s3069_s12 }
 0x221   : > { %v1130_v31 = vsel %vm1129_vm7, %v1122_v38, %v4205_v56 }
 0x222   : > { %v4214_v61 = vmul.f32 %v4198_v47, %v1130_v31  ;;  %2315 = vperm.xlu0 %3007, %v2301_v15  }
 0x223   : > { %1956 = vperm.xlu1 %3008, %v1952_v42   ;;  %v2302_v42 = vld [vmem:[%s5173_s7 + $0x18] sm:$0xff] }
 0x224   : > { %5394 = vst [vmem:[#allocation46_spill] sm:$0xff] %v4214_v61  ;;  %v4216_v37 = vpop.permute.xlu0 %1324  ;;  %v4218_v20 = vpop.permute.xlu1 %999 }
 0x227   : > { %2310 = vperm.xlu1 %3008, %v2300_v25   ;;  %v4248_v25 = vrot.slane %v5389_v8, %v5395_v62 }
 0x228   : > { %v1118_v31 = vpop.permute.xlu0 %1117  ;;  %v4231_v15 = vpop.permute.xlu1 %873 }
 0x229   : > { %v1132_v61 = vsel %vm1129_vm7, %v1118_v31, %v1122_v38  ;;  %v1134_v33 = vsel %vm1129_vm7, %v1114_v59, %v1118_v31  ;;  %5401 = vst [vmem:[#allocation99_spill] sm:$0xff] %v4248_v25 }
 0x22a   : > { %v4241_v13 = vmul.f32 %v4225_v17, %v1134_v33  ;;  %v4244_v14 = vmul.f32 %v4229_v46, %v1132_v61  ;;  %v5403_v33 = vld [vmem:[#allocation76_spill] sm:$0xff] }
 0x22b   : > { %2320 = vperm.xlu1 %3008, %v2302_v42   ;;  %v4262_v61 = vrot.slane %v5403_v33, %v5381_v22  ;;  %v4266_v31 = vrot.slane %v5403_v33, %v5395_v62  ;;  %v4289_v46 = vrot.slane %v5403_v33, %v5397_v4 }
 0x22c   : > { %5399 = vst [vmem:[#allocation97_spill] sm:$0xff] %v4241_v13  ;;  %5400 = vst [vmem:[#allocation98_spill] sm:$0xff] %v4244_v14  ;;  %v4250_v60 = vpop.permute.xlu0 %991  ;;  %v4252_v50 = vpop.permute.xlu1 %746 }
 0x22d   : > { %v1008_v38 = vsel %vm1003_vm1, %v988_v24, %v4250_v60  ;;  %5404 = vst [vmem:[#allocation101_spill] sm:$0xff] %v4262_v61  ;;  %5405 = vst [vmem:[#allocation102_spill] sm:$0xff] %v4266_v31 }
 0x22e   : > { %v4258_v59 = vmul.f32 %v4248_v25, %v1008_v38  ;;  %5410 = vst [vmem:[#allocation107_spill] sm:$0xff] %v4289_v46 }
 0x230   : > { %5402 = vst [vmem:[#allocation100_spill] sm:$0xff] %v4258_v59  ;;  %v4268_v42 = vpop.permute.xlu0 %1115  ;;  %v1573_v14 = vpop.permute.xlu1 %1572 }
 0x231   : > { %5406 = vst [vmem:[#allocation103_spill] sm:$0xff] %v4268_v42  ;;  %v1137_v13 = vsel %vm1129_vm7, %v3979_v10, %v4268_v42  ;;  %v1587_v24 = vsel %vm1584_vm6, %v1573_v14, %v1577_v27  ;;  %v1589_v38 = vsel %vm1584_vm6, %v4123_v1, %v1573_v14 }
 0x232   : > { %v4279_v59 = vmul.f32 %v1170_v52, %v1137_v13  ;;  %v4282_v25 = vmul.f32 %v4262_v61, %v1589_v38  ;;  %v4285_v17 = vmul.f32 %v4266_v31, %v1587_v24  ;;  %v4303_v52 = vrot.slane %v3905_v36, %v5381_v22 }
 0x233   : > { %v4307_v24 = vrot.slane %v3905_v36, %v5395_v62 }
 0x234   : > { %5407 = vst [vmem:[#allocation104_spill] sm:$0xff] %v4279_v59  ;;  %5408 = vst [vmem:[#allocation105_spill] sm:$0xff] %v4282_v25  ;;  %v4291_v10 = vpop.permute.xlu0 %1123  ;;  %v4293_v42 = vpop.permute.xlu1 %1580 }
 0x235   : > { %5409 = vst [vmem:[#allocation106_spill] sm:$0xff] %v4285_v17  ;;  %5411 = vst [vmem:[#allocation108_spill] sm:$0xff] %v4291_v10  ;;  %v1585_v14 = vsel %vm1584_vm6, %v1577_v27, %v4293_v42  ;;  %v4330_v17 = vrot.slane %v3905_v36, %v5397_v4 }
 0x236   : > { %5412 = vst [vmem:[#allocation109_spill] sm:$0xff] %v4293_v42  ;;  %v4299_v13 = vmul.f32 %v4289_v46, %v1585_v14  ;;  %5414 = vst [vmem:[#allocation111_spill] sm:$0xff] %v4303_v52 }
 0x237   : > { %5415 = vst [vmem:[#allocation112_spill] sm:$0xff] %v4307_v24  ;;  %5420 = vst [vmem:[#allocation117_spill] sm:$0xff] %v4330_v17 }
 0x238   : > { %5413 = vst [vmem:[#allocation110_spill] sm:$0xff] %v4299_v13  ;;  %v4309_v38 = vpop.permute.xlu0 %989  ;;  %v1447_v59 = vpop.permute.xlu1 %1446 }
 0x239   : > { %5416 = vst [vmem:[#allocation113_spill] sm:$0xff] %v4309_v38  ;;  %v1011_v25 = vsel %vm1003_vm1, %v4039_v2, %v4309_v38  ;;  %v1461_v27 = vsel %vm1458_vm8, %v1447_v59, %v1451_v51  ;;  %v1463_v14 = vsel %vm1458_vm8, %v4140_v30, %v1447_v59 }
 0x23a   : > { %v4320_v13 = vmul.f32 %v1044_v57, %v1011_v25  ;;  %v4323_v46 = vmul.f32 %v4303_v52, %v1463_v14  ;;  %v4326_v42 = vmul.f32 %v4307_v24, %v1461_v27  ;;  %v5424_v25 = vld [vmem:[#allocation44_spill] sm:$0xff]  ;;  %v4348_v27 = vrot.slane %v3971_v34, %v5381_v22 }
 0x23b   : > { %v4344_v14 = vrot.slane %v5424_v25, %v5381_v22  ;;  %v5429_v22 = vld [vmem:[#allocation16_spill] sm:$0xff] }
 0x23c   : > { %5417 = vst [vmem:[#allocation114_spill] sm:$0xff] %v4320_v13  ;;  %5418 = vst [vmem:[#allocation115_spill] sm:$0xff] %v4323_v46  ;;  %v4332_v2 = vpop.permute.xlu0 %997  ;;  %v4334_v38 = vpop.permute.xlu1 %1454  ;;  %v4352_v13 = vrot.slane %v3971_v34, %v5395_v62  ;;  %v1032_v46 = vrot.slane %v5389_v8, %v3891_v32  ;;  %v5430_v24 = vld [vmem:[#allocation36_spill] sm:$0xff]  ;;  %v5431_v62 = vld [vmem:[#allocation35_spill] sm:$0xff] }
 0x23d   : > { %5419 = vst [vmem:[#allocation116_spill] sm:$0xff] %v4326_v42  ;;  %5421 = vst [vmem:[#allocation118_spill] sm:$0xff] %v4332_v2  ;;  %v1459_v59 = vsel %vm1458_vm8, %v1451_v51, %v4334_v38  ;;  %v906_v51 = vrot.slane %v5424_v25, %v3891_v32  ;;  %v5428_v42 = vld [vmem:[#allocation28_spill] sm:$0xff]  ;;  %v1142_v61 = vsel %vm1129_vm7, %v5431_v62, %v5430_v24 }
 0x23e   : > { %5422 = vst [vmem:[#allocation119_spill] sm:$0xff] %v4334_v38  ;;  %v4340_v57 = vmul.f32 %v4330_v17, %v1459_v59  ;;  %5425 = vst [vmem:[#allocation121_spill] sm:$0xff] %v4344_v14  ;;  %v5426_v59 = vld [vmem:[#allocation51_spill] sm:$0xff]  ;;  %v4366_v52 = vmul.f32 %v5429_v22, %v5428_v42 }
 0x240   : > { %5423 = vst [vmem:[#allocation120_spill] sm:$0xff] %v4340_v57  ;;  %v4360_v57 = vrot.slane %v5426_v59, %v3891_v32  ;;  %v4362_v17 = vpop.permute.xlu0 %863  ;;  %v1321_v38 = vpop.permute.xlu1 %1320 }
 0x241   : > { %5427 = vst [vmem:[#allocation51_spill] sm:$0xff] %v4362_v17  ;;  %v885_v31 = vsel %vm877_vm2, %v4103_v41, %v4362_v17  ;;  %v1335_v29 = vsel %vm1332_vm9, %v1321_v38, %v4216_v37  ;;  %v1337_v55 = vsel %vm1332_vm9, %v4157_v6, %v1321_v38  ;;  %v4393_v41 = vrot.slane %v3971_v34, %v5397_v4 }
 0x242   : > { %v4383_v42 = vmul.f32 %v4344_v14, %v885_v31  ;;  %v4386_v3 = vmul.f32 %v4348_v27, %v1337_v55  ;;  %v4389_v24 = vmul.f32 %v4352_v13, %v1335_v29  ;;  %v4397_v17 = vrot.slane %v5384_v7, %v3879_v18  ;;  %v5436_v29 = vld [vmem:[#allocation42_spill] sm:$0xff] }
 0x243   : > { %5435 = vst [vmem:[#allocation122_spill] sm:$0xff] %v4393_v41  ;;  %v4401_v38 = vrot.slane %v5384_v7, %v3891_v32  ;;  %v1621_v31 = vrot.slane %v5403_v33, %v3410_v44  ;;  %v4407_v55 = vrot.slane %v3905_v36, %v3410_v44  ;;  %v1154_v32 = vrot.slane %v3893_v53, %v3879_v18 }
 0x244   : > { %5432 = vst [vmem:[#allocation28_spill] sm:$0xff] %v4383_v42  ;;  %5433 = vst [vmem:[#allocation16_spill] sm:$0xff] %v4386_v3  ;;  %v5437_v42 = vld [vmem:[#allocation41_spill] sm:$0xff]  ;;  %v4415_v3 = vrot.slane %v3971_v34, %v3410_v44  ;;  %v1128_v7 = vpop.permute.xlu0 %1127  ;;  %v1192_v33 = vmul.f32 %v4067_v43, %v1142_v61  ;;  %v1144_v36 = vsel %vm1129_vm7, %v4205_v56, %v5431_v62 }
 0x245   : > { %5434 = vst [vmem:[#allocation35_spill] sm:$0xff] %v4389_v24  ;;  %v1016_v14 = vsel %vm1003_vm1, %v5437_v42, %v5436_v29  ;;  %v4419_v24 = vpop.permute.xlu1 %1328  ;;  %v1131_v29 = vsel %vm1129_vm7, %v4291_v10, %v1128_v7  ;;  %v1145_v44 = vsel %vm1129_vm7, %v1128_v7, %v3790_v5  ;;  %v4444_v62 = vrot.slane %v5389_v8, %v5392_v63  ;;  %v5441_v56 = vld [vmem:[#allocation49_spill] sm:$0xff]  ;;  %v5442_v10 = vld [vmem:[#allocation47_spill] sm:$0xff] }
 0x246   : > { %5438 = vst [vmem:[#allocation42_spill] sm:$0xff] %v4419_v24  ;;  %v1333_v53 = vsel %vm1332_vm9, %v4216_v37, %v4419_v24  ;;  %v1199_v34 = vmul.f32 %v1154_v32, %v1145_v44  ;;  %v4437_v43 = vmul.f32 %v4198_v47, %v1131_v29  ;;  %v890_v5 = vsel %vm877_vm2, %v5442_v10, %v5441_v56  ;;  %v5443_v29 = vld [vmem:[#allocation66_spill] sm:$0xff]  ;;  %v5444_v44 = vld [vmem:[#allocation29_spill] sm:$0xff] }
 0x247   : > { %v4440_v61 = vmul.f32 %v4393_v41, %v1333_v53  ;;  %v1028_v7 = vrot.slane %v5389_v8, %v3879_v18  ;;  %v902_v37 = vrot.slane %v5424_v25, %v3879_v18  ;;  %v1066_v47 = vmul.f32 %v1032_v46, %v1016_v14  ;;  %v5447_v25 = vld [vmem:[#allocation68_spill] sm:$0xff] }
 0x248   : > { %5439 = vst [vmem:[#allocation41_spill] sm:$0xff] %v4437_v43  ;;  %v1593_v53 = vsel %vm1584_vm6, %v5444_v44, %v5443_v29  ;;  %v1074_v43 = vmul.f32 %v1032_v46, %v4020_v11  ;;  %v1191_v56 = vmul.f32 %v1154_v32, %v1144_v36  ;;  %v1002_v41 = vpop.permute.xlu0 %1001  ;;  %1988 = vmatpush1.msra.mxu0 %v1199_v34  ;;  %v5445_v46 = vld [vmem:[#allocation80_spill] sm:$0xff] }
 0x249   : > { %5440 = vst [vmem:[#allocation123_spill] sm:$0xff] %v4440_v61  ;;  %v1591_v61 = vsel %vm1584_vm6, %v5443_v29, %v4123_v1  ;;  %v4463_v24 = vpop.permute.xlu1 %1570  ;;  %v1018_v14 = vsel %vm1003_vm1, %v4218_v20, %v5437_v42  ;;  %v1005_v44 = vsel %vm1003_vm1, %v4332_v2, %v1002_v41  ;;  %v1019_v11 = vsel %vm1003_vm1, %v1002_v41, %v3808_v54  ;;  %v5446_v29 = vld [vmem:[#allocation78_spill] sm:$0xff] }
 0x24a   : > { %v1592_v36 = vsel %vm1584_vm6, %v5445_v46, %v4463_v24  ;;  %1989 = vmatprep.subr.mxu0 %v1192_v33  ;;  %v776_v34 = vrot.slane %v5426_v59, %v3879_v18  ;;  %v1073_v1 = vmul.f32 %v1028_v7, %v1019_v11  ;;  %v4482_v42 = vmul.f32 %v4444_v62, %v1005_v44 }
 0x24b   : > { %v1657_v32 = vmul.f32 %v1621_v31, %v1592_v36  ;;  %1990 = vmatpush1.msra.mxu0 %v1191_v56  ;;  %v1648_v2 = vmul.f32 %v5446_v29, %v1593_v53  ;;  %v1467_v54 = vsel %vm1458_vm8, %v3594_v23, %v5447_v25  ;;  %v948_v41 = vmul.f32 %v906_v51, %v4090_v48 }
 0x24c   : > { %1991 = vmatprep.subr.mxu0 %v1074_v43  ;;  %v940_v33 = vmul.f32 %v906_v51, %v890_v5  ;;  %v1649_v46 = vmul.f32 %v1621_v31, %v1591_v61  ;;  %v1465_v18 = vsel %vm1458_vm8, %v5447_v25, %v4140_v30  ;;  %v1065_v44 = vmul.f32 %v1028_v7, %v1018_v14  ;;  %v4494_v11 = vpop.permute.xlu0 %875  ;;  %v5448_v25 = vld [vmem:[#allocation81_spill] sm:$0xff]  ;;  %v5449_v51 = vld [vmem:[#allocation56_spill] sm:$0xff]  ;;  %v5450_v31 = vld [vmem:[#allocation54_spill] sm:$0xff] }
 0x24d   : > { %2048 = vmatprep.subr.mxu1 %v1657_v32  ;;  %v4496_v53 = vpop.permute.xlu1 %1444  ;;  %1992 = vmatpush1.msra.mxu0 %v1073_v1  ;;  %v892_v23 = vsel %vm877_vm2, %v4231_v15, %v5442_v10  ;;  %v893_v48 = vsel %vm877_vm2, %v4494_v11, %v3837_v12  ;;  %v765_v43 = vsel %vm752_vm3, %v5450_v31, %v5449_v51  ;;  %v5451_v5 = vld [vmem:[#allocation70_spill] sm:$0xff]  ;;  %v5453_v32 = vld [vmem:[#allocation72_spill] sm:$0xff] }
 0x24e   : > { %v1466_v30 = vsel %vm1458_vm8, %v3973_v39, %v4496_v53  ;;  %1993 = vmatprep.subr.mxu0 %v1066_v47  ;;  %2049 = vmatpush1.msra.mxu1 %v5448_v25  ;;  %v947_v61 = vmul.f32 %v902_v37, %v893_v48  ;;  %v1522_v12 = vmul.f32 %v3969_v49, %v1467_v54  ;;  %v4592_v25 = vld [vmem:[%s5170_s4] sm:$0xff]  ;;  %v5459_v51 = vld [vmem:[#allocation90_spill] sm:$0xff] }
 0x24f   : > { %v1531_v10 = vmul.f32 %v4407_v55, %v1466_v30  ;;  %1994 = vmatpush1.msra.mxu0 %v1065_v44  ;;  %2050 = vmatprep.subr.mxu1 %v1649_v46  ;;  %v1341_v39 = vsel %vm1332_vm9, %v3604_v26, %v5451_v5  ;;  %v822_v7 = vmul.f32 %v4360_v57, %v4131_v45 }
 0x250   : > { %1995 = vmatprep.subr.mxu0 %v948_v41  ;;  %2051 = vmatpush1.msra.mxu1 %v1648_v2  ;;  %v1523_v47 = vmul.f32 %v4407_v55, %v1465_v18  ;;  %v1339_v56 = vsel %vm1332_vm9, %v5451_v5, %v4157_v6  ;;  %v939_v14 = vmul.f32 %v902_v37, %v892_v23  ;;  %v4528_v36 = vpop.permute.xlu0 %748 }
 0x251   : > { %2052 = vmatprep.subr.mxu1 %v1531_v10  ;;  %v4530_v49 = vpop.permute.xlu1 %1318  ;;  %1996 = vmatpush1.msra.mxu0 %v947_v61  ;;  %v767_v26 = vsel %vm752_vm3, %v4252_v50, %v5450_v31  ;;  %v768_v45 = vsel %vm752_vm3, %v4528_v36, %v3860_v28  ;;  %v4548_v37 = vrot.slane %v5389_v8, %v5397_v4  ;;  %v5452_v28 = vld [vmem:[#allocation34_spill] sm:$0xff]  ;;  %v5460_v31 = vld [vmem:[#allocation36_spill] sm:$0xff]  ;;  %v5461_v61 = vld [vmem:[#allocation95_spill] sm:$0xff] }
 0x252   : > { %v1340_v6 = vsel %vm1332_vm9, %v4037_v19, %v4530_v49  ;;  %1997 = vmatprep.subr.mxu0 %v940_v33  ;;  %2053 = vmatpush1.msra.mxu1 %v3991_v21  ;;  %v821_v2 = vmul.f32 %v776_v34, %v768_v45  ;;  %v1396_v1 = vmul.f32 %v4035_v58, %v1341_v39  ;;  %v5454_v19 = vld [vmem:[#allocation61_spill] sm:$0xff]  ;;  %v5463_v39 = vld [vmem:[#allocation86_spill] sm:$0xff] }
 0x253   : > { %v1405_v55 = vmul.f32 %v4415_v3, %v1340_v6  ;;  %1998 = vmatpush1.msra.mxu0 %v939_v14  ;;  %2054 = vmatprep.subr.mxu1 %v1523_v47  ;;  %v1721_v29 = vsel %vm1710_vm5, %v5453_v32, %v5452_v28  ;;  %v814_v21 = vmul.f32 %v4360_v57, %v765_v43  ;;  %v5464_v47 = vld [vmem:[#allocation85_spill] sm:$0xff]  ;;  %v5466_v6 = vld [vmem:[#allocation83_spill] sm:$0xff] }
 0x254   : > { %1999 = vmatprep.subr.mxu0 %v822_v7  ;;  %2055 = vmatpush1.msra.mxu1 %v1522_v12  ;;  %v1723_v54 = vsel %vm1710_vm5, %v5454_v19, %v5453_v32  ;;  %v1397_v41 = vmul.f32 %v4415_v3, %v1339_v56  ;;  %v813_v8 = vmul.f32 %v776_v34, %v767_v26  ;;  %v1575_v33 = vpop.permute.xlu0 %1574  ;;  %v4628_v14 = vld [vmem:[%s5170_s4 + $0x10] sm:$0xff]  ;;  %v5465_v26 = vld [vmem:[#allocation82_spill] sm:$0xff] }
 0x255   : > { %2056 = vmatprep.subr.mxu1 %v1405_v55  ;;  %v996_v58 = vpop.permute.xlu1 %995  ;;  %2000 = vmatpush1.msra.mxu0 %v821_v2  ;;  %v1781_v46 = vmul.f32 %v4401_v38, %v4077_v0  ;;  %v1780_v3 = vmul.f32 %v4397_v17, %v4082_v9  ;;  %v1773_v0 = vmul.f32 %v4401_v38, %v1721_v29  ;;  %v5458_v38 = vld [vmem:[#allocation37_spill] sm:$0xff]  ;;  %v5467_v2 = vld [vmem:[#allocation102_spill] sm:$0xff] }
 0x256   : > { %v1004_v18 = vsel %vm1003_vm1, %v996_v58, %v4218_v20  ;;  %v1006_v57 = vsel %vm1003_vm1, %v4250_v60, %v996_v58  ;;  %2001 = vmatprep.subr.mxu0 %v814_v21  ;;  %2057 = vmatpush1.msra.mxu1 %v4054_v35  ;;  %v5455_v20 = vld [vmem:[#allocation27_spill] sm:$0xff]  ;;  %v1772_v35 = vmul.f32 %v4397_v17, %v1723_v54  ;;  %v5469_v21 = vld [vmem:[#allocation88_spill] sm:$0xff] }
 0x257   : > { %v4573_v34 = vmul.f32 %v4548_v37, %v1006_v57  ;;  %v4576_v44 = vmul.f32 %v4444_v62, %v1004_v18  ;;  %2002 = vmatpush1.msra.mxu0 %v813_v8  ;;  %2058 = vmatprep.subr.mxu1 %v1397_v41  ;;  %v5456_v60 = vld [vmem:[#allocation15_spill] sm:$0xff]  ;;  %v5457_v62 = vld [vmem:[#allocation26_spill] sm:$0xff]  ;;  %v1138_v17 = vsel %vm1129_vm7, %v5458_v38, %v5382_v16  ;;  %v5462_v16 = vld [vmem:[#allocation25_spill] sm:$0xff] }
 0x258   : > { %2031 = vmatprep.subr.mxu0 %v1781_v46  ;;  %2059 = vmatpush1.msra.mxu1 %v1396_v1  ;;  %v1278_v23 = vmul.f32 %v5456_v60, %v5455_v20  ;;  %v4582_v48 = vpop.permute.xlu0 %1582  ;;  %v1271_v30 = vmul.f32 %v5429_v22, %v5457_v62  ;;  %v4605_v22 = vld [vmem:[%s5170_s4 + $0x18] sm:$0xff]  ;;  %v1140_v43 = vsel %vm1129_vm7, %v5460_v31, %v5458_v38  ;;  %v5468_v1 = vld [vmem:[#allocation101_spill] sm:$0xff]  ;;  %v5470_v8 = vld [vmem:[#allocation87_spill] sm:$0xff] }
 0x259   : > { %2060 = vmatprep.subr.mxu1 %v4366_v52  ;;  %v4585_v9 = vpop.permute.xlu1 %1696  ;;  %2032 = vmatpush2.msra.mxu0 %v1780_v3  ;;  %v1590_v12 = vsel %vm1584_vm6, %v4463_v24, %v1575_v33  ;;  %v1194_v56 = vmul.f32 %v5464_v47, %v1138_v17  ;;  %v1193_v45 = vmul.f32 %v5465_v26, %v1140_v43  ;;  %v5472_v46 = vld [vmem:[#allocation48_spill] sm:$0xff]  ;;  %v5473_v18 = vld [vmem:[#allocation106_spill] sm:$0xff]  ;;  %v5475_v3 = vld [vmem:[#allocation43_spill] sm:$0xff] }
 0x25a   : > { %v1718_v52 = vsel %vm1710_vm5, %v5459_v51, %v4585_v9  ;;  %2033 = vmatprep.subr.mxu0 %v1773_v0  ;;  %2061 = vmatpush1.msra.mxu1 %v1278_v23  ;;  %v1658_v28 = vmul.f32 %v5468_v1, %v1590_v12  ;;  %v5476_v0 = vld [vmem:[#allocation105_spill] sm:$0xff]  ;;  %v5477_v60 = vld [vmem:[#allocation92_spill] sm:$0xff]  ;;  %v5479_v51 = vld [vmem:[#allocation55_spill] sm:$0xff] }
 0x25b   : > { %v4612_v10 = vmul.f32 %v5461_v61, %v1718_v52  ;;  %2034 = vmatpush2.msra.mxu0 %v1772_v35  ;;  %2062 = vmatprep.subr.mxu1 %v1271_v30  ;;  %v5478_v30 = vld [vmem:[#allocation89_spill] sm:$0xff]  ;;  %v5480_v52 = vld [vmem:[#allocation116_spill] sm:$0xff]  ;;  %v5481_v31 = vld [vmem:[#allocation50_spill] sm:$0xff] }
 0x25c   : > { %2036 = vmatmul.mubr.f32.vlgmr.msra.gmra.mxu0 %v4592_v25  ;;  %2063 = vmatpush1.msra.mxu1 %v5462_v16  ;;  %v1449_v5 = vpop.permute.xlu0 %1448  ;;  %v5482_v43 = vld [vmem:[#allocation115_spill] sm:$0xff]  ;;  %v5483_v61 = vld [vmem:[#allocation58_spill] sm:$0xff]  ;;  %v5484_v16 = vld [vmem:[#allocation52_spill] sm:$0xff] }
 0x25d   : > { %2064 = vmatprep.subr.mxu1 %v5463_v39  ;;  %v4620_v7 = vpop.permute.xlu1 %1578  ;;  %2904 = vmatprep.mubr.msk.f32.mxu0 %vm1964_vm4, %v4605_v22  ;;  %v1464_v32 = vsel %vm1458_vm8, %v4496_v53, %v1449_v5  ;;  %v5474_v53 = vld [vmem:[#allocation111_spill] sm:$0xff]  ;;  %v5486_v39 = vld [vmem:[#allocation32_spill] sm:$0xff] }
 0x25e   : > { %v1588_v24 = vsel %vm1584_vm6, %v1575_v33, %v4620_v7  ;;  %2065 = vmatpush1.msra.mxu1 %v5466_v6  ;;  %v5471_v33 = vld [vmem:[#allocation112_spill] sm:$0xff]  ;;  %v1532_v57 = vmul.f32 %v5474_v53, %v1464_v32  ;;  %v5485_v12 = vld [vmem:[#allocation23_spill] sm:$0xff] }
 0x25f   : > { %v1659_v55 = vmul.f32 %v5467_v2, %v1588_v24  ;;  %2066 = vmatprep.subr.mxu1 %v1194_v56  ;;  %v5490_v24 = vld [vmem:[#allocation75_spill] sm:$0xff]  ;;  %v5493_v32 = vld [vmem:[#allocation64_spill] sm:$0xff] }
 0x260   : > { %2042 = vmatmul.mubr.f32.gmra.mxu0 %v4628_v14  ;;  %2067 = vmatpush1.msra.mxu1 %v1193_v45  ;;  %v4641_v29 = vpop.permute.xlu0 %1456  ;;  %v5489_v45 = vld [vmem:[#allocation93_spill] sm:$0xff]  ;;  %v1281_v6 = vmul.f32 %v5485_v12, %v5490_v24  ;;  %v5491_v2 = vld [vmem:[#allocation59_spill] sm:$0xff] }
 0x261   : > { %2068 = vmatprep.subr.mxu1 %v5469_v21  ;;  %v4644_v54 = vpop.permute.xlu1 %1452  ;;  %2125 = vmatprep.subr.mxu0 %v1659_v55  ;;  %v5492_v1 = vld [vmem:[#allocation79_spill] sm:$0xff]  ;;  %v1600_v21 = vsel %vm1584_vm6, %v4582_v48, %v5493_v32  ;;  %v5512_v32 = vld [vmem:[#allocation74_spill] sm:$0xff] }
 0x262   : > { %v1462_v41 = vsel %vm1458_vm8, %v1449_v5, %v4644_v54  ;;  %2069 = vmatpush1.msra.mxu1 %v5470_v8  ;;  %2126 = vmatpush1.msra.mxu0 %v1658_v28  ;;  %v1273_v5 = vmul.f32 %v5485_v12, %v5484_v16  ;;  %v1511_v28 = vrot.slane %v5492_v1, %v5392_v63 }
 0x263   : > { %v1533_v58 = vmul.f32 %v5471_v33, %v1462_v41  ;;  %2070 = vmatprep.subr.mxu1 %v5472_v46  ;;  %2127 = vmatprep.subr.mxu0 %v5473_v18  ;;  %v5494_v41 = vld [vmem:[#allocation108_spill] sm:$0xff]  ;;  %v5495_v33 = vld [vmem:[#allocation62_spill] sm:$0xff]  ;;  %v1586_v16 = vsel %vm1584_vm6, %v4620_v7, %v4582_v48  ;;  %v5509_v48 = vld [vmem:[#allocation73_spill] sm:$0xff] }
 0x264   : > { %2071 = vmatpush1.msra.mxu1 %v5475_v3  ;;  %2128 = vmatpush1.msra.mxu0 %v5476_v0  ;;  %v1323_v20 = vpop.permute.xlu0 %1322  ;;  %v5497_v18 = vld [vmem:[#allocation84_spill] sm:$0xff]  ;;  %v5499_v0 = vld [vmem:[#allocation35_spill] sm:$0xff] }
 0x265   : > { %2072 = vmatprep.subr.mxu1 %v5477_v60  ;;  %v4657_v23 = vpop.permute.xlu1 %1326  ;;  %2129 = vmatprep.subr.mxu0 %v1533_v58  ;;  %v1338_v35 = vsel %vm1332_vm9, %v4530_v49, %v1323_v20  ;;  %v5496_v58 = vld [vmem:[#allocation44_spill] sm:$0xff]  ;;  %v4702_v53 = vrot.slane %v5497_v18, %v5392_v63  ;;  %v5510_v7 = vld [vmem:[#allocation19_spill] sm:$0xff]  ;;  %v5516_v18 = vld [vmem:[#allocation17_spill] sm:$0xff] }
 0x266   : > { %v1336_v62 = vsel %vm1332_vm9, %v1323_v20, %v4657_v23  ;;  %2073 = vmatpush1.msra.mxu1 %v5478_v30  ;;  %2130 = vmatpush1.msra.mxu0 %v1532_v57  ;;  %v1406_v38 = vmul.f32 %v4348_v27, %v1338_v35  ;;  %v5487_v27 = vld [vmem:[#allocation21_spill] sm:$0xff]  ;;  %v4698_v46 = vrot.slane %v5496_v58, %v5392_v63  ;;  %v5498_v57 = vld [vmem:[#allocation18_spill] sm:$0xff]  ;;  %v5501_v60 = vld [vmem:[#allocation20_spill] sm:$0xff] }
 0x267   : > { %v1407_v17 = vmul.f32 %v4352_v13, %v1336_v62  ;;  %2074 = vmatprep.subr.mxu1 %v5479_v51  ;;  %2131 = vmatprep.subr.mxu0 %v5480_v52  ;;  %v1272_v47 = vmul.f32 %v5487_v27, %v5486_v39  ;;  %v5488_v13 = vld [vmem:[#allocation76_spill] sm:$0xff]  ;;  %v1280_v55 = vmul.f32 %v5487_v27, %v5491_v2  ;;  %v5500_v20 = vld [vmem:[#allocation57_spill] sm:$0xff]  ;;  %v5502_v62 = vld [vmem:[#allocation30_spill] sm:$0xff] }
 0x268   : > { %2075 = vmatpush1.msra.mxu1 %v5481_v31  ;;  %2132 = vmatpush1.msra.mxu0 %v5482_v43  ;;  %v4672_v49 = vpop.permute.xlu0 %1330  ;;  %v1637_v56 = vrot.slane %v5488_v13, %v5392_v63  ;;  %v4711_v35 = vrot.slane %v5496_v58, %v5501_v60  ;;  %v5503_v30 = vld [vmem:[#allocation109_spill] sm:$0xff]  ;;  %v5505_v52 = vld [vmem:[#allocation16_spill] sm:$0xff]  ;;  %v4724_v43 = vrot.slane %v5496_v58, %v5397_v4  ;;  %v5506_v27 = vld [vmem:[#allocation91_spill] sm:$0xff] }
 0x269   : > { %2076 = vmatprep.subr.mxu1 %v5483_v61  ;;  %2133 = vmatprep.subr.mxu0 %v1407_v17  ;;  %v1120_v26 = vpop.permute.xlu1 %1119  ;;  %v5504_v17 = vld [vmem:[#allocation103_spill] sm:$0xff]  ;;  %v5507_v13 = vld [vmem:[#allocation118_spill] sm:$0xff] }
 0x26a   : > { %2077 = vmatpush1.msra.mxu1 %v5489_v45  ;;  %2134 = vmatpush1.msra.mxu0 %v1406_v38  ;;  %v1133_v8 = vsel %vm1129_vm7, %v1120_v26, %v5494_v41  ;;  %v1599_v38 = vsel %vm1584_vm6, %v5503_v30, %v5502_v62  ;;  %v1135_v51 = vsel %vm1129_vm7, %v5504_v17, %v1120_v26  ;;  %v5508_v45 = vld [vmem:[#allocation113_spill] sm:$0xff]  ;;  %v5511_v2 = vld [vmem:[#allocation99_spill] sm:$0xff] }
 0x26b   : > { %2078 = vmatprep.subr.mxu1 %v5495_v33  ;;  %v4705_v3 = vmul.f32 %v5498_v57, %v1133_v8  ;;  %2135 = vmatprep.subr.mxu0 %v5499_v0  ;;  %v1661_v61 = vmul.f32 %v1637_v56, %v1600_v21  ;;  %v5513_v21 = vld [vmem:[#allocation31_spill] sm:$0xff]  ;;  %v4758_v57 = vrot.slane %v5426_v59, %v5516_v18  ;;  %v5517_v0 = vld [vmem:[#allocation65_spill] sm:$0xff] }
 0x26c   : > { %2079 = vmatpush1.msra.mxu1 %v5500_v20  ;;  %2136 = vmatpush1.msra.mxu0 %v5505_v52  ;;  %v872_v31 = vpop.permute.xlu0 %871  ;;  %v5514_v41 = vld [vmem:[#allocation119_spill] sm:$0xff]  ;;  %v1460_v20 = vsel %vm1458_vm8, %v4644_v54, %v4641_v29  ;;  %v4776_v17 = vrot.slane %v5426_v59, %v5392_v63  ;;  %v5520_v52 = vld [vmem:[#allocation97_spill] sm:$0xff] }
 0x26d   : > { %2108 = vmatprep.subr.mxu1 %v4612_v10  ;;  %v879_v12 = vsel %vm877_vm2, %v872_v31, %v4494_v11  ;;  %v994_v39 = vpop.permute.xlu1 %993  ;;  %2137 = vmatprep.subr.mxu0 %v1281_v6  ;;  %v1204_v11 = vmul.f32 %v5510_v7, %v1135_v51  ;;  %v1473_v8 = vsel %vm1458_vm8, %v5514_v41, %v5513_v21  ;;  %v5515_v33 = vld [vmem:[#allocation107_spill] sm:$0xff]  ;;  %v5526_v7 = vld [vmem:[#allocation110_spill] sm:$0xff]  ;;  %v5528_v21 = vld [vmem:[#allocation53_spill] sm:$0xff] }
 0x26e   : > { %2109 = vmatpush2.msra.mxu1 %v5506_v27  ;;  %v4735_v10 = vmul.f32 %v4698_v46, %v879_v12  ;;  %v1007_v26 = vsel %vm1003_vm1, %v994_v39, %v5507_v13  ;;  %v1009_v24 = vsel %vm1003_vm1, %v5508_v45, %v994_v39  ;;  %2138 = vmatpush1.msra.mxu0 %v1280_v55  ;;  %v5518_v30 = vld [vmem:[#allocation51_spill] sm:$0xff]  ;;  %v5523_v39 = vld [vmem:[#allocation117_spill] sm:$0xff]  ;;  %v5524_v13 = vld [vmem:[#allocation40_spill] sm:$0xff] }
 0x26f   : > { %2110 = vmatprep.subr.mxu1 %v5509_v48  ;;  %v1078_v6 = vmul.f32 %v5511_v2, %v1009_v24  ;;  %v4747_v1 = vmul.f32 %v4548_v37, %v1007_v26  ;;  %2139 = vmatprep.subr.mxu0 %v1273_v5  ;;  %v1660_v58 = vmul.f32 %v5515_v33, %v1586_v16  ;;  %v5525_v24 = vld [vmem:[#allocation67_spill] sm:$0xff]  ;;  %v5529_v41 = vld [vmem:[#allocation121_spill] sm:$0xff] }
 0x270   : > { %2111 = vmatpush2.msra.mxu1 %v5512_v32  ;;  %2140 = vmatpush1.msra.mxu0 %v1272_v47  ;;  %v866_v55 = vpop.permute.xlu0 %865  ;;  %v1653_v37 = vmul.f32 %v1637_v56, %v1599_v38  ;;  %v1474_v5 = vsel %vm1458_vm8, %v4641_v29, %v5517_v0  ;;  %v5519_v38 = vld [vmem:[#allocation104_spill] sm:$0xff]  ;;  %v1527_v51 = vmul.f32 %v1511_v28, %v1473_v8 }
 0x271   : > { %2113 = vmatmul.mubr.f32.vlgmr.msra.gmra.mxu1 %v4592_v25  ;;  %2202 = vmatprep.subr.mxu1 %v1661_v61  ;;  %v868_v47 = vpop.permute.xlu1 %867  ;;  %v5522_v61 = vld [vmem:[#allocation42_spill] sm:$0xff]  ;;  %v1535_v12 = vmul.f32 %v1511_v28, %v1474_v5  ;;  %v1534_v27 = vmul.f32 %v5523_v39, %v1460_v20  ;;  %v1334_v45 = vsel %vm1332_vm9, %v4657_v23, %v4672_v49  ;;  %v5537_v39 = vld [vmem:[#allocation24_spill] sm:$0xff] }
 0x272   : > { %2141 = vmatprep.subr.mxu0 %v1204_v11  ;;  %v881_v62 = vsel %vm877_vm2, %v868_v47, %v872_v31  ;;  %v883_v56 = vsel %vm877_vm2, %v5518_v30, %v868_v47  ;;  %2203 = vmatpush1.msra.mxu1 %v1660_v58  ;;  %v5521_v31 = vld [vmem:[#allocation33_spill] sm:$0xff]  ;;  %v1348_v48 = vsel %vm1332_vm9, %v4672_v49, %v5525_v24  ;;  %v5527_v28 = vld [vmem:[#allocation94_spill] sm:$0xff] }
 0x273   : > { %2142 = vmatpush1.msra.mxu0 %v5519_v38  ;;  %v952_v29 = vmul.f32 %v4711_v35, %v883_v56  ;;  %v4780_v54 = vmul.f32 %v4724_v43, %v881_v62  ;;  %2204 = vmatprep.subr.mxu1 %v1653_v37  ;;  %v1347_v16 = vsel %vm1332_vm9, %v5522_v61, %v5521_v31  ;;  %v5530_v58 = vld [vmem:[#allocation114_spill] sm:$0xff]  ;;  %v5531_v37 = vld [vmem:[#allocation100_spill] sm:$0xff] }
 0x274   : > { %2143 = vmatprep.subr.mxu0 %v5520_v52  ;;  %2906 = vmatprep.mubr.msk.f32.mxu1 %vm1964_vm4, %v4605_v22  ;;  %v737_v26 = vpop.permute.xlu0 %736  ;;  %v796_v5 = vrot.slane %v5426_v59, %v5501_v60  ;;  %v1401_v20 = vmul.f32 %v4702_v53, %v1347_v16  ;;  %v5532_v47 = vld [vmem:[#allocation122_spill] sm:$0xff]  ;;  %v5534_v56 = vld [vmem:[#allocation120_spill] sm:$0xff]  ;;  %v800_v16 = vrot.slane %v5426_v59, %v5397_v4 }
 0x275   : > { %2144 = vmatpush1.msra.mxu0 %v5524_v13  ;;  %2205 = vmatpush1.msra.mxu1 %v5526_v7  ;;  %v760_v11 = vsel %vm752_vm3, %v5527_v28, %v737_v26  ;;  %v862_v2 = vpop.permute.xlu1 %861  ;;  %v1408_v62 = vmul.f32 %v5532_v47, %v1334_v45  ;;  %v5533_v30 = vld [vmem:[#allocation38_spill] sm:$0xff]  ;;  %v5541_v45 = vld [vmem:[#allocation45_spill] sm:$0xff]  ;;  %v5542_v7 = vld [vmem:[#allocation71_spill] sm:$0xff] }
 0x276   : > { %2145 = vmatprep.subr.mxu0 %v1078_v6  ;;  %v825_v32 = vmul.f32 %v4758_v57, %v760_v11  ;;  %2119 = vmatmul.mubr.f32.gmra.mxu1 %v4628_v14  ;;  %v882_v23 = vsel %vm877_vm2, %v862_v2, %v866_v55  ;;  %v884_v49 = vsel %vm877_vm2, %v5528_v21, %v862_v2  ;;  %v5540_v13 = vld [vmem:[#allocation22_spill] sm:$0xff]  ;;  %v3009_v11 = vld [vmem:[%s5170_s4 + $0x8] sm:$0xff]  ;;  %v5543_v21 = vld [vmem:[#allocation39_spill] sm:$0xff] }
 0x277   : > { %2206 = vmatprep.subr.mxu1 %v1535_v12  ;;  %v943_v8 = vmul.f32 %v5529_v41, %v884_v49  ;;  %v944_v33 = vmul.f32 %v4711_v35, %v882_v23  ;;  %2146 = vmatpush1.msra.mxu0 %v5530_v58  ;;  %v1409_v6 = vmul.f32 %v4702_v53, %v1348_v48  ;;  %v5544_v58 = vld [vmem:[#allocation41_spill] sm:$0xff] }
 0x278   : > { %2207 = vmatpush1.msra.mxu1 %v1534_v27  ;;  %2147 = vmatprep.subr.mxu0 %v5531_v37  ;;  %v745_v0 = vpop.permute.xlu0 %744  ;;  %v1275_v24 = vmul.f32 %v5537_v39, %v5541_v45  ;;  %v1751_v28 = vrot.slane %v5542_v7, %v5516_v18  ;;  %v1274_v49 = vmul.f32 %v5540_v13, %v5543_v21  ;;  %v5545_v37 = vld [vmem:[#allocation60_spill] sm:$0xff] }
 0x279   : > { %2208 = vmatprep.subr.mxu1 %v1527_v51  ;;  %2148 = vmatpush1.msra.mxu0 %v5533_v30  ;;  %v754_v35 = vsel %vm752_vm3, %v745_v0, %v4528_v36  ;;  %v870_v38 = vpop.permute.xlu1 %869  ;;  %v5535_v36 = vld [vmem:[#allocation28_spill] sm:$0xff]  ;;  %v5548_v30 = vld [vmem:[#allocation77_spill] sm:$0xff] }
 0x27a   : > { %2209 = vmatpush1.msra.mxu1 %v5534_v56  ;;  %v4825_v52 = vmul.f32 %v4776_v17, %v754_v35  ;;  %v878_v51 = vsel %vm877_vm2, %v870_v38, %v4231_v15  ;;  %v880_v53 = vsel %vm877_vm2, %v866_v55, %v870_v38  ;;  %2149 = vmatprep.subr.mxu0 %v952_v29  ;;  %v5536_v15 = vld [vmem:[#allocation69_spill] sm:$0xff]  ;;  %v5538_v55 = vld [vmem:[#allocation123_spill] sm:$0xff] }
 0x27b   : > { %2210 = vmatprep.subr.mxu1 %v1409_v6  ;;  %v4833_v31 = vmul.f32 %v4724_v43, %v880_v53  ;;  %v4836_v61 = vmul.f32 %v4698_v46, %v878_v51  ;;  %2150 = vmatpush1.msra.mxu0 %v5535_v36  ;;  %v1283_v27 = vmul.f32 %v5537_v39, %v5536_v15  ;;  %v5539_v29 = vld [vmem:[#allocation63_spill] sm:$0xff] }
 0x27c   : > { %2211 = vmatpush1.msra.mxu1 %v1408_v62  ;;  %2151 = vmatprep.subr.mxu0 %v944_v33  ;;  %v739_v12 = vpop.permute.xlu0 %738  ;;  %v1282_v46 = vmul.f32 %v5540_v13, %v5539_v29  ;;  %v1755_v51 = vrot.slane %v5542_v7, %v5501_v60  ;;  %v1759_v53 = vrot.slane %v5542_v7, %v5397_v4  ;;  %v5549_v60 = vld [vmem:[#allocation96_spill] sm:$0xff] }
 0x27d   : > { %2212 = vmatprep.subr.mxu1 %v1401_v20  ;;  %2152 = vmatpush1.msra.mxu0 %v943_v8  ;;  %v741_v43 = vpop.permute.xlu1 %740  ;;  %v1763_v8 = vrot.slane %v5542_v7, %v5392_v63  ;;  %v5547_v63 = vld [vmem:[#allocation98_spill] sm:$0xff]  ;;  %v4941_v7 = vld [vmem:[%s5172_s6 + $0x8] sm:$0xff] }
 0x27e   : > { %2213 = vmatpush1.msra.mxu1 %v5538_v55  ;;  %v756_v59 = vsel %vm752_vm3, %v741_v43, %v745_v0  ;;  %v758_v48 = vsel %vm752_vm3, %v737_v26, %v741_v43  ;;  %2907 = vmatprep.mubr.msk.f32.mxu0 %vm1964_vm4, %v3009_v11 }
 0x27f   : > { %2214 = vmatprep.subr.mxu1 %v1283_v27  ;;  %v826_v2 = vmul.f32 %v796_v5, %v758_v48  ;;  %v827_v23 = vmul.f32 %v800_v16, %v756_v59  ;;  %2909 = vmatprep.mubr.msk.f32.mxu1 %vm1964_vm4, %v3009_v11  ;;  %v4933_v48 = vld [vmem:[%s5172_s6] sm:$0xff] }
 0x280   : > { %2215 = vmatpush1.msra.mxu1 %v1282_v46  ;;  %v1701_v41 = vpop.permute.xlu0 %1700 }
 0x281   : > { %2216 = vmatprep.subr.mxu1 %v1275_v24  ;;  %v1716_v18 = vsel %vm1710_vm5, %v4585_v9, %v1701_v41  ;;  %v735_v26 = vpop.permute.xlu1 %734  ;;  %2153 = vmatprep.subr.mxu0 %v826_v2  ;;  %v5546_v9 = vld [vmem:[#allocation46_spill] sm:$0xff] }
 0x282   : > { %2217 = vmatpush1.msra.mxu1 %v1274_v49  ;;  %v1784_v33 = vmul.f32 %v1751_v28, %v1716_v18  ;;  %v757_v6 = vsel %vm752_vm3, %v735_v26, %v739_v12  ;;  %v759_v0 = vsel %vm752_vm3, %v5545_v37, %v735_v26  ;;  %2154 = vmatpush1.msra.mxu0 %v825_v32 }
 0x283   : > { %2218 = vmatprep.subr.mxu1 %v5544_v58  ;;  %v817_v20 = vmul.f32 %v4758_v57, %v759_v0  ;;  %v818_v47 = vmul.f32 %v796_v5, %v757_v6 }
 0x284   : > { %2219 = vmatpush1.msra.mxu1 %v4705_v3  ;;  %v1709_v62 = vpop.permute.xlu0 %1708 }
 0x285   : > { %2220 = vmatprep.subr.mxu1 %v5546_v9  ;;  %v1726_v56 = vsel %vm1710_vm5, %v1709_v62, %v5548_v30  ;;  %v743_v35 = vpop.permute.xlu1 %742  ;;  %2155 = vmatprep.subr.mxu0 %v818_v47 }
 0x286   : > { %2221 = vmatpush1.msra.mxu1 %v5547_v63  ;;  %v1787_v38 = vmul.f32 %v1763_v8, %v1726_v56  ;;  %v753_v57 = vsel %vm752_vm3, %v743_v35, %v4252_v50  ;;  %v755_v3 = vsel %vm752_vm3, %v739_v12, %v743_v35  ;;  %2156 = vmatpush1.msra.mxu0 %v817_v20 }
 0x287   : > { %2222 = vmatprep.subr.mxu1 %v4482_v42  ;;  %v819_v32 = vmul.f32 %v800_v16, %v755_v3  ;;  %v820_v5 = vmul.f32 %v4776_v17, %v753_v57 }
 0x288   : > { %2223 = vmatpush1.msra.mxu1 %v4747_v1  ;;  %v1703_v4 = vpop.permute.xlu0 %1702 }
 0x289   : > { %2224 = vmatprep.subr.mxu1 %v4576_v44  ;;  %v1705_v50 = vpop.permute.xlu1 %1704 }
 0x28a   : > { %2225 = vmatpush1.msra.mxu1 %v4573_v34  ;;  %v1712_v42 = vsel %vm1710_vm5, %v1705_v50, %v1709_v62  ;;  %v1714_v17 = vsel %vm1710_vm5, %v1701_v41, %v1705_v50 }
 0x28b   : > { %2226 = vmatprep.subr.mxu1 %v4735_v10  ;;  %v1785_v1 = vmul.f32 %v1755_v51, %v1714_v17  ;;  %v1786_v36 = vmul.f32 %v1759_v53, %v1712_v42 }
 0x28c   : > { %2227 = vmatpush1.msra.mxu1 %v4780_v54 }
 0x28d   : > { %2228 = vmatprep.subr.mxu1 %v4836_v61  ;;  %v1699_v44 = vpop.permute.xlu1 %1698  ;;  %2185 = vmatprep.subr.mxu0 %v1785_v1 }
 0x28e   : > { %2229 = vmatpush1.msra.mxu1 %v4833_v31  ;;  %v1713_v34 = vsel %vm1710_vm5, %v1699_v44, %v1703_v4  ;;  %v1715_v10 = vsel %vm1710_vm5, %v5549_v60, %v1699_v44  ;;  %2186 = vmatpush2.msra.mxu0 %v1784_v33 }
 0x28f   : > { %2230 = vmatprep.subr.mxu1 %v4825_v52  ;;  %v1776_v16 = vmul.f32 %v1751_v28, %v1715_v10  ;;  %v1777_v12 = vmul.f32 %v1755_v51, %v1713_v34  ;;  %v4949_v28 = vld [vmem:[%s5172_s6 + $0x10] sm:$0xff] }
 0x290   : > { %2231 = vmatpush1.msra.mxu1 %v827_v23  ;;  %v4957_v23 = vld [vmem:[%s5172_s6 + $0x18] sm:$0xff] }
 0x291   : > { %2232 = vmatprep.subr.mxu1 %v820_v5  ;;  %v1707_v54 = vpop.permute.xlu1 %1706  ;;  %2187 = vmatprep.subr.mxu0 %v1777_v12 }
 0x292   : > { %2233 = vmatpush1.msra.mxu1 %v819_v32  ;;  %v1711_v31 = vsel %vm1710_vm5, %v1703_v4, %v1707_v54  ;;  %v1725_v52 = vsel %vm1710_vm5, %v1707_v54, %v5454_v19  ;;  %2188 = vmatpush2.msra.mxu0 %v1776_v16  ;;  %v2691_v16 = vld [vmem:[%s3331_s13] sm:$0xff] }
 0x293   : > { %2262 = vmatprep.subr.mxu1 %v1787_v38  ;;  %v1778_v61 = vmul.f32 %v1759_v53, %v1711_v31  ;;  %v1779_v15 = vmul.f32 %v1763_v8, %v1725_v52  ;;  %2190 = vmatmul.mubr.f32.vlgmr.msra.gmra.mxu0 %v4592_v25  ;;  %v2692_v31 = vld [vmem:[%s3331_s13 + $0x8] sm:$0xff] }
 0x294   : > { %2263 = vmatpush2.msra.mxu1 %v1786_v36  ;;  %2908 = vmatprep.mubr.msk.f32.mxu0 %vm1964_vm4, %v4605_v22 }
 0x295   : > { %2264 = vmatprep.subr.mxu1 %v1779_v15  ;;  %v4924_v43 = vpop.permute.xlu0 %1961 }
 0x296   : > { %2265 = vmatpush2.msra.mxu1 %v1778_v61 }
 0x297   : > { %2196 = vmatmul.mubr.f32.gmra.mxu0 %v4628_v14  ;;  %2267 = vmatmul.mubr.f32.vlgmr.msra.gmra.mxu1 %v4592_v25 }
 0x298   : > { %2910 = vmatprep.mubr.msk.f32.mxu1 %vm1964_vm4, %v4605_v22  ;;  %2399 = vmatprep.mubr.f32.mxu0 %v5550_v40 }
 0x299   : > { %v5008_v60 = vpop.permute.xlu0 %2305 }
 0x29b   : > { %2273 = vmatmul.mubr.f32.gmra.mxu1 %v4628_v14 }
 0x29c   : > { %2488 = vmatprep.mubr.f32.mxu1 %v5550_v40 }
 0x29e   : > { %v4922_v27 = vpop.permute.xlu1 %1956 }
 0x2a2   : > { %v5014_v15 = vpop.permute.xlu1 %2310 }
 0x31c   : > { %v2037_v19 = vpop.f32.mrf.mxu0 }
 0x31d   : > { %v2038_v22 = vadd.f32 %v2037_v19, %v4922_v27 }
 0x31e   : > { %v2039_v39 = vpop.f32.mrf.mxu0 }
 0x31f   : > { %v2040_v29 = vadd.f32 %v2039_v39, %v4922_v27  ;;  %v2279_v59 = vmax.f32 %v2038_v22, 0.0 }
 0x320   : > { %v2043_v55 = vpop.f32.mrf.mxu0 }
 0x321   : > { %v2044_v25 = vadd.f32 %v2043_v55, %v4924_v43  ;;  %v2280_v14 = vmax.f32 %v2040_v29, 0.0 }
 0x322   : > { %v2045_v13 = vpop.f32.mrf.mxu0 }
 0x323   : > { %v2046_v46 = vadd.f32 %v2045_v13, %v4924_v43  ;;  %v2287_v24 = vmax.f32 %v2044_v25, 0.0  ;;  %v5026_v13 = vpop.permute.xlu0 %2315 }
 0x325   : > { %v2288_v45 = vmax.f32 %v2046_v46, 0.0  ;;  %v2707_v46 = vld [vmem:[%s3331_s13 + $0x80] sm:$0xff] }
 0x327   : > { %2363 = vmatprep.subr.mxu0 %v2288_v45 }
 0x328   : > { %2364 = vmatpush1.msra.mxu0 %v2287_v24 }
 0x329   : > { %2365 = vmatprep.subr.mxu0 %v2280_v14 }
 0x32a   : > { %2366 = vmatpush1.msra.mxu0 %v2279_v59  ;;  %v2708_v59 = vld [vmem:[%s3331_s13 + $0x88] sm:$0xff] }
 0x32b   : > { %2911 = vmatmul.mubr.msk.f32.vlgmr.msra.gmra.mxu0 %vm1964_vm4, %v4933_v48 }
 0x32c   : > { %2405 = vmatprep.mubr.f32.mxu0 %v5550_v40 }
 0x32f   : > { %2912 = vmatmul.mubr.msk.f32.gmra.mxu0 %vm1964_vm4, %v4941_v7 }
 0x330   : > { %2411 = vmatprep.mubr.f32.mxu0 %v5550_v40 }
 0x331   : > { %v2114_v11 = vpop.f32.mrf.mxu1 }
 0x332   : > { %v2115_v8 = vadd.f32 %v2114_v11, %v4922_v27 }
 0x333   : > { %v2116_v2 = vpop.f32.mrf.mxu1  ;;  %2913 = vmatmul.mubr.msk.f32.gmra.mxu0 %vm1964_vm4, %v4949_v28 }
 0x334   : > { %2417 = vmatprep.mubr.f32.mxu0 %v5550_v40  ;;  %v2117_v18 = vadd.f32 %v2116_v2, %v4922_v27  ;;  %v2281_v37 = vmax.f32 %v2115_v8, 0.0  ;;  %v2715_v2 = vld [vmem:[%s3331_s13 + $0xc0] sm:$0xff] }
 0x336   : > { %v2120_v21 = vpop.f32.mrf.mxu1  ;;  %v2282_v6 = vmax.f32 %v2117_v18, 0.0 }
 0x337   : > { %2914 = vmatmul.mubr.msk.f32.gmra.mxu0 %vm1964_vm4, %v4957_v23  ;;  %v2121_v49 = vadd.f32 %v2120_v21, %v4924_v43 }
 0x338   : > { %2577 = vmatprep.mubr.f32.mxu0 %v5550_v40  ;;  %v2122_v41 = vpop.f32.mrf.mxu1 }
 0x339   : > { %v2123_v26 = vadd.f32 %v2122_v41, %v4924_v43  ;;  %v2289_v58 = vmax.f32 %v2121_v49, 0.0  ;;  %v2716_v41 = vld [vmem:[%s3331_s13 + $0xc8] sm:$0xff] }
 0x33b   : > { %v2290_v33 = vmax.f32 %v2123_v26, 0.0 }
 0x33d   : > { %2452 = vmatprep.subr.mxu1 %v2290_v33 }
 0x33e   : > { %2453 = vmatpush1.msra.mxu1 %v2289_v58  ;;  %v2693_v58 = vld [vmem:[%s3331_s13 + $0x10] sm:$0xff] }
 0x33f   : > { %2454 = vmatprep.subr.mxu1 %v2282_v6 }
 0x340   : > { %2455 = vmatpush1.msra.mxu1 %v2281_v37 }
 0x341   : > { %2915 = vmatmul.mubr.msk.f32.vlgmr.msra.gmra.mxu1 %vm1964_vm4, %v4933_v48 }
 0x342   : > { %2494 = vmatprep.mubr.f32.mxu1 %v5550_v40 }
 0x345   : > { %2916 = vmatmul.mubr.msk.f32.gmra.mxu1 %vm1964_vm4, %v4941_v7 }
 0x346   : > { %2500 = vmatprep.mubr.f32.mxu1 %v5550_v40 }
 0x349   : > { %2917 = vmatmul.mubr.msk.f32.gmra.mxu1 %vm1964_vm4, %v4949_v28 }
 0x34a   : > { %2506 = vmatprep.mubr.f32.mxu1 %v5550_v40 }
 0x34d   : > { %2918 = vmatmul.mubr.msk.f32.gmra.mxu1 %vm1964_vm4, %v4957_v23 }
 0x34e   : > { %2666 = vmatprep.mubr.f32.mxu1 %v5550_v40 }
 0x353   : > { %v2191_v0 = vpop.f32.mrf.mxu0 }
 0x354   : > { %v2192_v38 = vadd.f32 %v2191_v0, %v4922_v27  ;;  %v2694_v0 = vld [vmem:[%s3331_s13 + $0x18] sm:$0xff] }
 0x355   : > { %v2193_v20 = vpop.f32.mrf.mxu0 }
 0x356   : > { %v2194_v56 = vadd.f32 %v2193_v20, %v4922_v27  ;;  %v2283_v17 = vmax.f32 %v2192_v38, 0.0 }
 0x357   : > { %v2197_v47 = vpop.f32.mrf.mxu0  ;;  %v2268_v9 = vpop.f32.mrf.mxu1 }
 0x358   : > { %v2198_v62 = vadd.f32 %v2197_v47, %v4924_v43  ;;  %v2284_v53 = vmax.f32 %v2194_v56, 0.0  ;;  %v2269_v1 = vadd.f32 %v2268_v9, %v4922_v27 }
 0x359   : > { %v2270_v63 = vpop.f32.mrf.mxu1  ;;  %v2199_v30 = vpop.f32.mrf.mxu0 }
 0x35a   : > { %v2200_v35 = vadd.f32 %v2199_v30, %v4924_v43  ;;  %v2291_v32 = vmax.f32 %v2198_v62, 0.0  ;;  %v2271_v50 = vadd.f32 %v2270_v63, %v4922_v27  ;;  %v2285_v34 = vmax.f32 %v2269_v1, 0.0  ;;  %v2701_v62 = vld [vmem:[%s3331_s13 + $0x50] sm:$0xff] }
 0x35b   : > { %v2274_v57 = vpop.f32.mrf.mxu1 }
 0x35c   : > { %v2292_v3 = vmax.f32 %v2200_v35, 0.0  ;;  %v2275_v5 = vadd.f32 %v2274_v57, %v4924_v43  ;;  %v2286_v44 = vmax.f32 %v2271_v50, 0.0  ;;  %v2702_v35 = vld [vmem:[%s3331_s13 + $0x58] sm:$0xff] }
 0x35d   : > { %v2276_v51 = vpop.f32.mrf.mxu1  ;;  %v2710_v50 = vld [vmem:[%s3331_s13 + $0x98] sm:$0xff] }
 0x35e   : > { %v2277_v42 = vadd.f32 %v2276_v51, %v4924_v43  ;;  %2541 = vmatprep.subr.mxu0 %v2292_v3  ;;  %v2293_v4 = vmax.f32 %v2275_v5, 0.0  ;;  %v2700_v43 = vld [vmem:[%s3331_s13 + $0x48] sm:$0xff] }
 0x35f   : > { %2542 = vmatpush1.msra.mxu0 %v2291_v32  ;;  %v2709_v32 = vld [vmem:[%s3331_s13 + $0x90] sm:$0xff] }
 0x360   : > { %v2294_v36 = vmax.f32 %v2277_v42, 0.0  ;;  %2543 = vmatprep.subr.mxu0 %v2284_v53 }
 0x361   : > { %2544 = vmatpush1.msra.mxu0 %v2283_v17 }
 0x362   : > { %2919 = vmatmul.mubr.msk.f32.vlgmr.msra.gmra.mxu0 %vm1964_vm4, %v4933_v48  ;;  %2630 = vmatprep.subr.mxu1 %v2294_v36  ;;  %v2717_v36 = vld [vmem:[%s3331_s13 + $0xd0] sm:$0xff] }
 0x363   : > { %2631 = vmatpush1.msra.mxu1 %v2293_v4  ;;  %2583 = vmatprep.mubr.f32.mxu0 %v5550_v40 }
 0x364   : > { %2632 = vmatprep.subr.mxu1 %v2286_v44 }
 0x365   : > { %2633 = vmatpush1.msra.mxu1 %v2285_v34 }
 0x366   : > { %2920 = vmatmul.mubr.msk.f32.gmra.mxu0 %vm1964_vm4, %v4941_v7  ;;  %2923 = vmatmul.mubr.msk.f32.vlgmr.msra.gmra.mxu1 %vm1964_vm4, %v4933_v48 }
 0x367   : > { %2589 = vmatprep.mubr.f32.mxu0 %v5550_v40  ;;  %2672 = vmatprep.mubr.f32.mxu1 %v5550_v40 }
 0x36a   : > { %2921 = vmatmul.mubr.msk.f32.gmra.mxu0 %vm1964_vm4, %v4949_v28  ;;  %2924 = vmatmul.mubr.msk.f32.gmra.mxu1 %vm1964_vm4, %v4941_v7 }
 0x36b   : > { %2595 = vmatprep.mubr.f32.mxu0 %v5550_v40  ;;  %2678 = vmatprep.mubr.f32.mxu1 %v5550_v40 }
 0x36e   : > { %2922 = vmatmul.mubr.msk.f32.gmra.mxu0 %vm1964_vm4, %v4957_v23  ;;  %2925 = vmatmul.mubr.msk.f32.gmra.mxu1 %vm1964_vm4, %v4949_v28  ;;  %v5034_v28 = vpop.permute.xlu1 %2320 }
 0x36f   : > { %2684 = vmatprep.mubr.f32.mxu1 %v5550_v40  ;;  %v2699_v40 = vld [vmem:[%s3331_s13 + $0x40] sm:$0xff] }
 0x372   : > { %2926 = vmatmul.mubr.msk.f32.gmra.mxu1 %vm1964_vm4, %v4957_v23 }
 0x3eb   : > { %v2401_v10 = vpop.f32.mrf.mxu0 }
 0x3ec   : > { %v2402_v12 = vadd.f32 %v2401_v10, %v5008_v60  ;;  %v2718_v10 = vld [vmem:[%s3331_s13 + $0xd8] sm:$0xff] }
 0x3ed   : > { %v2403_v54 = vpop.f32.mrf.mxu0 }
 0x3ee   : > { %v2723_v52 = vadd.f32 %v2691_v16, %v2402_v12  ;;  %v2404_v61 = vadd.f32 %v2403_v54, %v5008_v60 }
 0x3ef   : > { %v2407_v19 = vpop.f32.mrf.mxu0 }
 0x3f0   : > { %2755 = vst [vmem:[%s5019_s23] sm:$0xff] %v2723_v52  ;;  %v2724_v39 = vadd.f32 %v2692_v31, %v2404_v61  ;;  %v2408_v27 = vadd.f32 %v2407_v19, %v5014_v15  ;;  %v2695_v52 = vld [vmem:[%s3331_s13 + $0x20] sm:$0xff] }
 0x3f1   : > { %v2409_v55 = vpop.f32.mrf.mxu0 }
 0x3f2   : > { %2756 = vst [vmem:[%s5019_s23 + $0x8] sm:$0xff] %v2724_v39  ;;  %v2731_v29 = vadd.f32 %v2699_v40, %v2408_v27  ;;  %v2410_v25 = vadd.f32 %v2409_v55, %v5014_v15  ;;  %v2696_v40 = vld [vmem:[%s3331_s13 + $0x28] sm:$0xff] }
 0x3f3   : > { %v2413_v22 = vpop.f32.mrf.mxu0 }
 0x3f4   : > { %2763 = vst [vmem:[%s5019_s23 + $0x40] sm:$0xff] %v2731_v29  ;;  %v2732_v45 = vadd.f32 %v2700_v43, %v2410_v25  ;;  %v2414_v14 = vadd.f32 %v2413_v22, %v5026_v13  ;;  %v2703_v43 = vld [vmem:[%s3331_s13 + $0x60] sm:$0xff]  ;;  %v2697_v25 = vld [vmem:[%s3331_s13 + $0x30] sm:$0xff] }
 0x3f5   : > { %v2415_v24 = vpop.f32.mrf.mxu0 }
 0x3f6   : > { %2764 = vst [vmem:[%s5019_s23 + $0x48] sm:$0xff] %v2732_v45  ;;  %v2739_v48 = vadd.f32 %v2707_v46, %v2414_v14  ;;  %v2416_v7 = vadd.f32 %v2415_v24, %v5026_v13  ;;  %v2704_v24 = vld [vmem:[%s3331_s13 + $0x68] sm:$0xff] }
 0x3f7   : > { %v2419_v11 = vpop.f32.mrf.mxu0 }
 0x3f8   : > { %2771 = vst [vmem:[%s5019_s23 + $0x80] sm:$0xff] %v2739_v48  ;;  %v2740_v23 = vadd.f32 %v2708_v59, %v2416_v7  ;;  %v2420_v21 = vadd.f32 %v2419_v11, %v5034_v28  ;;  %v2698_v48 = vld [vmem:[%s3331_s13 + $0x38] sm:$0xff] }
 0x3f9   : > { %v2421_v49 = vpop.f32.mrf.mxu0 }
 0x3fa   : > { %2772 = vst [vmem:[%s5019_s23 + $0x88] sm:$0xff] %v2740_v23  ;;  %v2747_v18 = vadd.f32 %v2715_v2, %v2420_v21  ;;  %v2422_v26 = vadd.f32 %v2421_v49, %v5034_v28  ;;  %v2711_v49 = vld [vmem:[%s3331_s13 + $0xa0] sm:$0xff] }
 0x3fc   : > { %2779 = vst [vmem:[%s5019_s23 + $0xc0] sm:$0xff] %v2747_v18  ;;  %v2748_v8 = vadd.f32 %v2716_v41, %v2422_v26  ;;  %v2705_v18 = vld [vmem:[%s3331_s13 + $0x70] sm:$0xff] }
 0x3fe   : > { %2780 = vst [vmem:[%s5019_s23 + $0xc8] sm:$0xff] %v2748_v8 }
 0x401   : > { %v2490_v33 = vpop.f32.mrf.mxu1 }
 0x402   : > { %v2491_v6 = vadd.f32 %v2490_v33, %v5008_v60 }
 0x403   : > { %v2492_v37 = vpop.f32.mrf.mxu1 }
 0x404   : > { %v2725_v20 = vadd.f32 %v2693_v58, %v2491_v6  ;;  %v2493_v47 = vadd.f32 %v2492_v37, %v5008_v60  ;;  %v2712_v37 = vld [vmem:[%s3331_s13 + $0xa8] sm:$0xff] }
 0x405   : > { %v2496_v9 = vpop.f32.mrf.mxu1 }
 0x406   : > { %2757 = vst [vmem:[%s5019_s23 + $0x10] sm:$0xff] %v2725_v20  ;;  %v2726_v63 = vadd.f32 %v2694_v0, %v2493_v47  ;;  %v2497_v30 = vadd.f32 %v2496_v9, %v5014_v15  ;;  %v2706_v0 = vld [vmem:[%s3331_s13 + $0x78] sm:$0xff] }
 0x407   : > { %v2498_v56 = vpop.f32.mrf.mxu1 }
 0x408   : > { %2758 = vst [vmem:[%s5019_s23 + $0x18] sm:$0xff] %v2726_v63  ;;  %v2733_v38 = vadd.f32 %v2701_v62, %v2497_v30  ;;  %v2499_v57 = vadd.f32 %v2498_v56, %v5014_v15  ;;  %v2719_v30 = vld [vmem:[%s3331_s13 + $0xe0] sm:$0xff] }
 0x409   : > { %v2502_v3 = vpop.f32.mrf.mxu1 }
 0x40a   : > { %2765 = vst [vmem:[%s5019_s23 + $0x50] sm:$0xff] %v2733_v38  ;;  %v2734_v5 = vadd.f32 %v2702_v35, %v2499_v57  ;;  %v2503_v51 = vadd.f32 %v2502_v3, %v5026_v13  ;;  %v2713_v35 = vld [vmem:[%s3331_s13 + $0xb0] sm:$0xff] }
 0x40b   : > { %v2504_v53 = vpop.f32.mrf.mxu1 }
 0x40c   : > { %2766 = vst [vmem:[%s5019_s23 + $0x58] sm:$0xff] %v2734_v5  ;;  %v2741_v42 = vadd.f32 %v2709_v32, %v2503_v51  ;;  %v2505_v17 = vadd.f32 %v2504_v53, %v5026_v13  ;;  %v2720_v51 = vld [vmem:[%s3331_s13 + $0xe8] sm:$0xff]  ;;  %v2714_v53 = vld [vmem:[%s3331_s13 + $0xb8] sm:$0xff] }
 0x40d   : > { %v2508_v1 = vpop.f32.mrf.mxu1 }
 0x40e   : > { %2773 = vst [vmem:[%s5019_s23 + $0x90] sm:$0xff] %v2741_v42  ;;  %v2742_v4 = vadd.f32 %v2710_v50, %v2505_v17  ;;  %v2509_v44 = vadd.f32 %v2508_v1, %v5034_v28 }
 0x40f   : > { %v2510_v34 = vpop.f32.mrf.mxu1 }
 0x410   : > { %2774 = vst [vmem:[%s5019_s23 + $0x98] sm:$0xff] %v2742_v4  ;;  %v2749_v16 = vadd.f32 %v2717_v36, %v2509_v44  ;;  %v2511_v12 = vadd.f32 %v2510_v34, %v5034_v28  ;;  %v2721_v4 = vld [vmem:[%s3331_s13 + $0xf0] sm:$0xff] }
 0x412   : > { %2781 = vst [vmem:[%s5019_s23 + $0xd0] sm:$0xff] %v2749_v16  ;;  %v2750_v54 = vadd.f32 %v2718_v10, %v2511_v12  ;;  %v2722_v12 = vld [vmem:[%s3331_s13 + $0xf8] sm:$0xff]  ;;  %s3064_s13 = scalar_lea.vmem %s5121_s20, 4096 }
 0x413   : > { %p3065_p12 = scmp.ne.s32.totalorder %s5121_s20, %s3064_s13  ;;  %p3072_p8 = scmp.lt.s32.totalorder %s3070_s19, %s3064_s13 }
 0x414   : > { %2782 = vst [vmem:[%s5019_s23 + $0xd8] sm:$0xff] %v2750_v54 }
 0x415   : > { %p3066_p2 = pnand %p3065_p12, %p5551_p13  ;;  %p3073_p9 = por %p3072_p8, %p3071_p7 }
 0x417   : > { %p3067_p3 = pneg %p3066_p2 }
 0x419   : > { %p3074_p10 = pnand %p3073_p9, %p3067_p3 }
 0x422   : > { %v2579_v31 = vpop.f32.mrf.mxu0 }
 0x423   : > { %v2580_v61 = vadd.f32 %v2579_v31, %v5008_v60 }
 0x424   : > { %v2581_v19 = vpop.f32.mrf.mxu0 }
 0x425   : > { %v2727_v39 = vadd.f32 %v2695_v52, %v2580_v61  ;;  %v2582_v27 = vadd.f32 %v2581_v19, %v5008_v60 }
 0x426   : > { %v2585_v55 = vpop.f32.mrf.mxu0  ;;  %v2668_v29 = vpop.f32.mrf.mxu1 }
 0x427   : > { %2759 = vst [vmem:[%s5019_s23 + $0x20] sm:$0xff] %v2727_v39  ;;  %v2728_v22 = vadd.f32 %v2696_v40, %v2582_v27  ;;  %v2586_v46 = vadd.f32 %v2585_v55, %v5014_v15  ;;  %v2669_v45 = vadd.f32 %v2668_v29, %v5008_v60 }
 0x428   : > { %v2587_v14 = vpop.f32.mrf.mxu0  ;;  %v2670_v59 = vpop.f32.mrf.mxu1 }
 0x429   : > { %2760 = vst [vmem:[%s5019_s23 + $0x28] sm:$0xff] %v2728_v22  ;;  %v2735_v7 = vadd.f32 %v2703_v43, %v2586_v46  ;;  %v2729_v11 = vadd.f32 %v2697_v25, %v2669_v45  ;;  %v2588_v2 = vadd.f32 %v2587_v14, %v5014_v15  ;;  %v2671_v23 = vadd.f32 %v2670_v59, %v5008_v60 }
 0x42a   : > { %v2591_v21 = vpop.f32.mrf.mxu0  ;;  %v2674_v41 = vpop.f32.mrf.mxu1 }
 0x42b   : > { %2767 = vst [vmem:[%s5019_s23 + $0x60] sm:$0xff] %v2735_v7  ;;  %2761 = vst [vmem:[%s5019_s23 + $0x30] sm:$0xff] %v2729_v11  ;;  %v2736_v26 = vadd.f32 %v2704_v24, %v2588_v2  ;;  %v2730_v8 = vadd.f32 %v2698_v48, %v2671_v23  ;;  %v2592_v33 = vadd.f32 %v2591_v21, %v5026_v13 }
 0x42c   : > { %v2675_v58 = vadd.f32 %v2674_v41, %v5014_v15  ;;  %v2593_v6 = vpop.f32.mrf.mxu0  ;;  %v2676_v60 = vpop.f32.mrf.mxu1 }
 0x42d   : > { %2768 = vst [vmem:[%s5019_s23 + $0x68] sm:$0xff] %v2736_v26  ;;  %2762 = vst [vmem:[%s5019_s23 + $0x38] sm:$0xff] %v2730_v8  ;;  %v2743_v20 = vadd.f32 %v2711_v49, %v2592_v33  ;;  %v2594_v9 = vadd.f32 %v2593_v6, %v5026_v13  ;;  %v2677_v62 = vadd.f32 %v2676_v60, %v5014_v15 }
 0x42e   : > { %v2737_v47 = vadd.f32 %v2705_v18, %v2675_v58  ;;  %v2597_v63 = vpop.f32.mrf.mxu0  ;;  %v2680_v56 = vpop.f32.mrf.mxu1 }
 0x42f   : > { %2775 = vst [vmem:[%s5019_s23 + $0xa0] sm:$0xff] %v2743_v20  ;;  %v2744_v38 = vadd.f32 %v2712_v37, %v2594_v9  ;;  %v2738_v57 = vadd.f32 %v2706_v0, %v2677_v62  ;;  %v2598_v3 = vadd.f32 %v2597_v63, %v5034_v28  ;;  %v2681_v32 = vadd.f32 %v2680_v56, %v5026_v13 }
 0x430   : > { %2769 = vst [vmem:[%s5019_s23 + $0x70] sm:$0xff] %v2737_v47  ;;  %v2599_v5 = vpop.f32.mrf.mxu0  ;;  %v2682_v15 = vpop.f32.mrf.mxu1 }
 0x431   : > { %2776 = vst [vmem:[%s5019_s23 + $0xa8] sm:$0xff] %v2744_v38  ;;  %2770 = vst [vmem:[%s5019_s23 + $0x78] sm:$0xff] %v2738_v57  ;;  %v2751_v50 = vadd.f32 %v2719_v30, %v2598_v3  ;;  %v2745_v42 = vadd.f32 %v2713_v35, %v2681_v32  ;;  %v2600_v17 = vadd.f32 %v2599_v5, %v5034_v28 }
 0x432   : > { %v2683_v1 = vadd.f32 %v2682_v15, %v5026_v13  ;;  %v2686_v36 = vpop.f32.mrf.mxu1 }
 0x433   : > { %2783 = vst [vmem:[%s5019_s23 + $0xe0] sm:$0xff] %v2751_v50  ;;  %2777 = vst [vmem:[%s5019_s23 + $0xb0] sm:$0xff] %v2745_v42  ;;  %v2752_v44 = vadd.f32 %v2720_v51, %v2600_v17  ;;  %v2687_v10 = vadd.f32 %v2686_v36, %v5034_v28 }
 0x434   : > { %v2746_v34 = vadd.f32 %v2714_v53, %v2683_v1  ;;  %v2688_v16 = vpop.f32.mrf.mxu1 }
 0x435   : > { %2784 = vst [vmem:[%s5019_s23 + $0xe8] sm:$0xff] %v2752_v44  ;;  %v2753_v54 = vadd.f32 %v2721_v4, %v2687_v10  ;;  %v2689_v13 = vadd.f32 %v2688_v16, %v5034_v28 }
 0x436   : > { %2778 = vst [vmem:[%s5019_s23 + $0xb8] sm:$0xff] %v2746_v34 }
 0x437   : > { %2785 = vst [vmem:[%s5019_s23 + $0xf0] sm:$0xff] %v2753_v54  ;;  %v2754_v31 = vadd.f32 %v2722_v12, %v2689_v13 }
 0x439   : > { %2786 = vst [vmem:[%s5019_s23 + $0xf8] sm:$0xff] %v2754_v31 }
 0x43a   : > { %3077 = shalt.err (!%p3074_p10)
}
 0x43b   : > { %s3078_s26 = scalar_lea.hbm %s5119_s9, 4096  ;;  %s3082_s15 = scalar_lea.hbm %s5174_s8, 8192 }
 0x43c   : > { %p3079_p5 = scmp.ne.s32.totalorder %s5119_s9, %s3078_s26  ;;  %p3083_p4 = scmp.lt.s32.totalorder %s5119_s9, %s5174_s8 }
 0x43d   : > { %p3084_p0 = scmp.lt.s32.totalorder %s3082_s15, %s3078_s26 }
 0x43e   : > { %p3080_p11 = pnand %p3079_p5, %p5551_p13 }
 0x43f   : > { %p3085_p1 = por %p3084_p0, %p3083_p4 }
 0x440   : > { %p3081_p6 = pneg %p3080_p11 }
 0x442   : > { %p3086_p12 = pnand %p3085_p1, %p3081_p6 }
 0x444   : > { %3089 = shalt.err (!%p3086_p12)
}
 0x445   : > { %s3150_s14 = smov 1024   ;;  %s3151_s25 = smov 2048  }
 0x446   : > { %s3152_s21 = smov 64  }
 0x447   : > { %2940 = dma.vmem_to_hbm [thread:$0]  (%p5551_p13), %s5121_s20, 4096, %s5119_s9, %s2788_s24, %s3150_s14, %s3151_s25, %s3152_s21  }
 0x448 PF: > { %s2816_s13 = sand.u32 1, %s3120_s27   ;;  %p5552_p2 = scmp.ne.s32.totalorder %s5290_s18, 0 }
 0x449   : > { %p5553_p3 = scmp.ge.s32.totalorder %s3132_s30, 2  ;;  %s2817_s16 = scalar_lea.sflag [#allocation5], %s2816_s13 }
 0x44b   : > { %p2951_p7 = pnand %p5553_p3, %p5552_p2 }
 0x44d   : > { %p2952_p8 = pneg %p2951_p7 }
 0x44f   : > { %3115 = dma.done.wait (%p2952_p8), %s2817_s16, 4096  }
 0x450   : > { %3117 = vsyncadd (%p2952_p8), %s2817_s16, 4294963200  ;;  %s5554_s30 = sld [smem:[#allocation13_spill]]  ;;  %s5557_s27 = smov %s3124_s28 }
 0x451   : > { %s5555_s12 = sld [smem:[#allocation12_spill]] }
 0x452   : > { %s5556_s29 = sld [smem:[#allocation14_spill]] }
 0x456   : > { %p22_p9 = scmp.ge.s32.totalorder %s5554_s30, 4  }
 0x457   : > { %s5558_s28 = smov %s5555_s12 }
 0x458   :  { %24 = sbr.rel (!%p22_p9) target bundleno = 6 (0x6), region = 109 }
 0x45d   :  { %2822 = vsyncpa [#allocation4], 1 }
 0x45e   :  { %2824 = vsyncpa [#allocation4 + $0x1], 1 }
 0x45f   :  { %2825 = vsyncpa [#allocation7], 1 }
 0x460   :  { %2826 = vsyncpa [#allocation5], 1 }
 0x461   :  { %2828 = vsyncpa [#allocation5 + $0x1], 1 }

</bundles_post_ra>
